<compile_context>
chip_gen: v6e
topology: v6e:2x2x1
jax: 0.10.0
libtpu: 0.0.40
codegen_flags: <defaults>
</compile_context>

<pallas_src>
import functools

import jax
import jax.numpy as jnp
from jax.experimental import pallas as pl
from jax.experimental.pallas import tpu as pltpu


# ---------------------------------------------------------------------------
# Pallas kernels
# ---------------------------------------------------------------------------
def _conv_relu_kernel(x_ref, w_ref, b_ref, o_ref, *, khp, kwp, oh, ws):
    """Stride-1 valid conv + bias + ReLU for one (space-to-depth'ed) image.

    The spatial dims of the input are flattened so every (di, dj) filter tap
    becomes ONE contiguous 2-D static slice and ONE MXU matmul over ALL
    output positions (khp*kwp matmuls total).  Wrap-around columns
    (oj >= ow) are junk and are sliced away by the caller.

    x_ref: (1, oh*ws + (khp-1)*ws + (kwp-1), C)  bf16  flattened + padded
    w_ref: (khp*kwp, C, OC)                      bf16  per-tap matmul weights
    b_ref: (1, OC)                               f32
    o_ref: (1, oh*ws, OC)                        bf16  rows in (oi, oj) order
    """
    n_oc = o_ref.shape[-1]
    nrows = oh * ws
    acc = jnp.zeros((nrows, n_oc), jnp.float32)
    for di in range(khp):                      # static unroll (khp*kwp <= 9)
        for dj in range(kwp):
            start = di * ws + dj               # static slice start
            lhs = x_ref[0, start:start + nrows, :]          # (nrows, C)
            acc = acc + jnp.dot(lhs, w_ref[di * kwp + dj],
                                preferred_element_type=jnp.float32)
    acc = jnp.maximum(acc + b_ref[...], 0.0)   # fused f32 bias + ReLU epilogue
    o_ref[0, :, :] = acc.astype(o_ref.dtype)


def _mlp3_kernel(x_ref, w1_ref, b1_ref, w2_ref, b2_ref, w3_ref, b3_ref, o_ref):
    """Fused Linear->ReLU->Linear->ReLU->Linear (bf16 operands, f32 accum)."""
    h = jnp.dot(x_ref[...], w1_ref[...], preferred_element_type=jnp.float32)
    h = jnp.maximum(h + b1_ref[...], 0.0)
    h = jnp.dot(h.astype(jnp.bfloat16), w2_ref[...],
                preferred_element_type=jnp.float32)
    h = jnp.maximum(h + b2_ref[...], 0.0)
    h = jnp.dot(h.astype(jnp.bfloat16), w3_ref[...],
                preferred_element_type=jnp.float32)
    o_ref[...] = (h + b3_ref[...]).astype(o_ref.dtype)


# ---------------------------------------------------------------------------
# Layout helpers (trace-time / cheap byte-preserving reshuffles, no im2col)
# ---------------------------------------------------------------------------
def _space_to_depth(x, s):
    """(N, H, W, C) -> (N, H//s, W//s, s*s*C); bijective, no byte inflation."""
    if s == 1:
        return x
    n, h, w, c = x.shape
    x = x.reshape(n, h // s, s, w // s, s, c)
    x = x.transpose(0, 1, 3, 2, 4, 5)
    return x.reshape(n, h // s, w // s, s * s * c)


def _conv_weight_s2d(w, s):
    """PyTorch (OC, C, KH, KW) -> (KH/s * KW/s, s*s*C, OC) matching s2d input."""
    oc, c, kh, kw = w.shape
    khp, kwp = kh // s, kw // s
    wt = w.reshape(oc, c, khp, s, kwp, s)
    wt = wt.transpose(2, 4, 3, 5, 1, 0)            # (di, dj, si, sj, c, oc)
    return wt.reshape(khp * kwp, s * s * c, oc)


def conv2d_relu(x, w, b, stride):
    """x: (N, H, W, C) bf16 NHWC; w: (OC, C, KH, KW) f32 (PyTorch); b: (OC,).

    Valid conv + bias + ReLU -> (N, oh, ow, OC) bf16 NHWC, via one pallas_call.
    """
    n, h, wd, c = x.shape
    oc, cw, kh, kw = w.shape
    assert c == cw, (c, cw)
    assert kh % stride == 0 and kw % stride == 0
    oh = (h - kh) // stride + 1
    ow = (wd - kw) // stride + 1
    # Crop to the exactly covered region (divisible by stride), then s2d.
    x = x[:, :stride * (oh - 1) + kh, :stride * (ow - 1) + kw, :]
    xs = _space_to_depth(x, stride)                          # (N, Hs, Ws, C')
    _, hs, ws, cp = xs.shape
    khp, kwp = kh // stride, kw // stride
    # Flatten spatial dims; pad (kwp-1) zero rows so the last tap's slice
    # stays in bounds.
    xf = xs.reshape(n, hs * ws, cp)
    if kwp > 1:
        xf = jnp.pad(xf, ((0, 0), (0, kwp - 1), (0, 0)))
    wk = _conv_weight_s2d(w, stride).astype(jnp.bfloat16)    # (kh'*kw', C', OC)

    nrows = oh * ws
    flops = 2 * n * nrows * (khp * kwp * cp) * oc
    bytes_accessed = 2 * (xf.size + wk.size + n * nrows * oc) + 4 * oc

    out = pl.pallas_call(
        functools.partial(_conv_relu_kernel, khp=khp, kwp=kwp, oh=oh, ws=ws),
        grid=(n,),
        in_specs=[
            pl.BlockSpec((1,) + xf.shape[1:], lambda i: (i, 0, 0)),
            pl.BlockSpec(wk.shape, lambda i: (0, 0, 0)),
            pl.BlockSpec((1, oc), lambda i: (0, 0)),
        ],
        out_specs=pl.BlockSpec((1, nrows, oc), lambda i: (i, 0, 0)),
        out_shape=jax.ShapeDtypeStruct((n, nrows, oc), jnp.bfloat16),
        compiler_params=pltpu.CompilerParams(dimension_semantics=("parallel",)),
        cost_estimate=pl.CostEstimate(flops=flops, transcendentals=0,
                                      bytes_accessed=bytes_accessed),
    )(xf, wk, b.reshape(1, oc).astype(jnp.float32))
    # Drop the junk wrap-around columns: (N, oh, ws, OC) -> (N, oh, ow, OC).
    return out.reshape(n, oh, ws, oc)[:, :, :ow, :]


_HEAD_PAD = 128   # pad the narrow Q head to a full 128-lane tile


def mlp_head(feats, params, out_dims, conv_out_chw):
    """feats: (B, F) bf16, rows flattened in NHWC (h, w, c) order.

    conv_out_chw = (C3, H3, W3) of the conv-stack output (PyTorch NCHW view).
    Returns (B, out_dims) f32 Q-values via one fused pallas_call.
    """
    b_sz, f_dim = feats.shape
    c3, h3, w3 = conv_out_chw
    # Trace-time weight prep (in a real deployment, pre-transform params once).
    # Fold the PyTorch NCHW flatten order into f1_w's rows:
    w1 = params["f1_w"].reshape(c3, h3, w3, -1).transpose(1, 2, 0, 3)
    w1 = w1.reshape(f_dim, -1).astype(jnp.bfloat16)
    b1 = params["f1_b"].reshape(1, -1).astype(jnp.float32)
    w2 = params["f2_w"].astype(jnp.bfloat16)
    b2 = params["f2_b"].reshape(1, -1).astype(jnp.float32)
    # Zero-pad the narrow head to 128 lanes (free FLOPs, unmasked stores):
    k3 = params["f3_w"].shape[0]
    w3p = jnp.zeros((k3, _HEAD_PAD), jnp.float32).at[:, :out_dims].set(params["f3_w"])
    w3p = w3p.astype(jnp.bfloat16)
    b3p = jnp.zeros((1, _HEAD_PAD), jnp.float32).at[:, :out_dims].set(
        params["f3_b"].reshape(1, -1))

    n1, n2 = w1.shape[1], w2.shape[1]
    tile_b = b_sz if b_sz <= 512 else 512
    flops = 2 * b_sz * (f_dim * n1 + n1 * n2 + n2 * _HEAD_PAD)
    bytes_accessed = 2 * (feats.size + w1.size + w2.size + w3p.size) + 4 * b_sz * _HEAD_PAD

    q_pad = pl.pallas_call(
        _mlp3_kernel,
        grid=(pl.cdiv(b_sz, tile_b),),
        in_specs=[
            pl.BlockSpec((tile_b, f_dim), lambda i: (i, 0)),
            pl.BlockSpec(w1.shape, lambda i: (0, 0)),
            pl.BlockSpec(b1.shape, lambda i: (0, 0)),
            pl.BlockSpec(w2.shape, lambda i: (0, 0)),
            pl.BlockSpec(b2.shape, lambda i: (0, 0)),
            pl.BlockSpec(w3p.shape, lambda i: (0, 0)),
            pl.BlockSpec(b3p.shape, lambda i: (0, 0)),
        ],
        out_specs=pl.BlockSpec((tile_b, _HEAD_PAD), lambda i: (i, 0)),
        out_shape=jax.ShapeDtypeStruct((b_sz, _HEAD_PAD), jnp.float32),
        compiler_params=pltpu.CompilerParams(dimension_semantics=("parallel",)),
        cost_estimate=pl.CostEstimate(flops=flops, transcendentals=0,
                                      bytes_accessed=bytes_accessed),
    )(feats, w1, b1, w2, b2, w3p, b3p)
    return q_pad[:, :out_dims]


# ---------------------------------------------------------------------------
# ConvolutionalDQN forward (PyTorch semantics: NCHW input, NCHW flatten)
# ---------------------------------------------------------------------------
@jax.jit
def conv_dqn_forward(x_nchw, params):
    x = jnp.transpose(x_nchw, (0, 2, 3, 1)).astype(jnp.bfloat16)   # NHWC, bf16
    h = conv2d_relu(x, params["c1_w"], params["c1_b"], stride=4)
    h = conv2d_relu(h, params["c2_w"], params["c2_b"], stride=2)
    h = conv2d_relu(h, params["c3_w"], params["c3_b"], stride=1)
    n, h3, w3, c3 = h.shape
    feats = h.reshape(n, h3 * w3 * c3)           # free reshape (NHWC flatten)
    out_dims = params["f3_w"].shape[1]
    return mlp_head(feats, params, out_dims, (c3, h3, w3))


# ---------------------------------------------------------------------------
# Pure-XLA f32 reference (mirrors the PyTorch module exactly)
# ---------------------------------------------------------------------------
def reference_forward(x_nchw, params):
    hi = jax.lax.Precision.HIGHEST
    h = x_nchw
    for wn, bn, s in (("c1_w", "c1_b", 4), ("c2_w", "c2_b", 2), ("c3_w", "c3_b", 1)):
        h = jax.lax.conv_general_dilated(
            h, params[wn], window_strides=(s, s), padding="VALID",
            dimension_numbers=("NCHW", "OIHW", "NCHW"), precision=hi)
        h = jnp.maximum(h + params[bn].reshape(1, -1, 1, 1), 0.0)
    feats = h.reshape(h.shape[0], -1)            # PyTorch NCHW flatten
    h = jnp.maximum(jnp.dot(feats, params["f1_w"], precision=hi) + params["f1_b"], 0.0)
    h = jnp.maximum(jnp.dot(h, params["f2_w"], precision=hi) + params["f2_b"], 0.0)
    return jnp.dot(h, params["f3_w"], precision=hi) + params["f3_b"]


# ---------------------------------------------------------------------------
# Params / shapes
# ---------------------------------------------------------------------------
def init_params(key, in_channels, feature_dims, out_dims):
    ks = jax.random.split(key, 12)
    s = 0.05
    return {
        "c1_w": s * jax.random.normal(ks[0], (32, in_channels, 8, 8), jnp.float32),
        "c1_b": s * jax.random.normal(ks[1], (32,), jnp.float32),
        "c2_w": s * jax.random.normal(ks[2], (64, 32, 4, 4), jnp.float32),
        "c2_b": s * jax.random.normal(ks[3], (64,), jnp.float32),
        "c3_w": s * jax.random.normal(ks[4], (64, 64, 3, 3), jnp.float32),
        "c3_b": s * jax.random.normal(ks[5], (64,), jnp.float32),
        # Linear weights stored as (in, out) so y = x @ W + b; f1_w rows are
        # indexed in the PyTorch NCHW-flatten order.
        "f1_w": s * jax.random.normal(ks[6], (feature_dims, 128), jnp.float32),
        "f1_b": s * jax.random.normal(ks[7], (128,), jnp.float32),
        "f2_w": s * jax.random.normal(ks[8], (128, 256), jnp.float32),
        "f2_b": s * jax.random.normal(ks[9], (256,), jnp.float32),
        "f3_w": s * jax.random.normal(ks[10], (256, out_dims), jnp.float32),
        "f3_b": s * jax.random.normal(ks[11], (out_dims,), jnp.float32),
    }


def conv_out_hw(hw):
    h = (hw - 8) // 4 + 1
    h = (h - 4) // 2 + 1
    h = (h - 3) // 1 + 1
    return h


if __name__ == "__main__":
    key = jax.random.PRNGKey(0)
    k_x, k_p = jax.random.split(key)

    # Small deterministic input consistent with the module: NCHW, 4 stacked
    # frames, spatial 44 (minimum viable for the k=8/4/3, s=4/2/1 conv stack):
    # 44 -> 10 -> 4 -> 2 spatial through the convs.
    batch, in_channels, hw = 2, 4, 44
    out_dims = 6
    feat_hw = conv_out_hw(hw)                    # = 2
    feature_dims = 64 * feat_hw * feat_hw        # = 256, matches feature_dims()

    x = jax.random.normal(k_x, (batch, in_channels, hw, hw), jnp.float32)
    params = init_params(k_p, in_channels, feature_dims, out_dims)

    q_vals = conv_dqn_forward(x, params)
    jax.block_until_ready(q_vals)
    assert q_vals.shape == (batch, out_dims), q_vals.shape
    assert q_vals.dtype == jnp.float32

    # Numerical sanity check against the f32 XLA reference (loose tolerance:
    # the Pallas path uses bf16 operands with f32 accumulation).
    q_ref = reference_forward(x, params)
    err = float(jnp.max(jnp.abs(q_vals - q_ref)))
    assert err <= 5e-2, ("mismatch vs reference", err)

    print("KERNEL_OK")
</pallas_src>

<mosaic_0001>
module attributes {stable_mosaic.version = 11 : i64} {
  func.func @_conv_relu_kernel(%arg0: i32, %arg1: memref<1x122x64xbf16, #tpu.memory_space<vmem>>, %arg2: memref<4x64x32xbf16, #tpu.memory_space<vmem>>, %arg3: memref<1x32xf32, #tpu.memory_space<vmem>>, %arg4: memref<1x110x32xbf16, #tpu.memory_space<vmem>>) attributes {dimension_semantics = [#tpu.dimension_semantics<parallel>], iteration_bounds = array<i64: 2>, scalar_prefetch = 0 : i64, scratch_operands = 0 : i64, tpu.core_type = #tpu.core_type<tc>, window_params = [{transform_indices = @transform_0, window_bounds = array<i64: 1, 122, 64>}, {pipeline_mode = #tpu.pipeline_mode<synchronous>, transform_indices = @transform_1, window_bounds = array<i64: 4, 64, 32>}, {pipeline_mode = #tpu.pipeline_mode<synchronous>, transform_indices = @transform_2, window_bounds = array<i64: 1, 32>}, {transform_indices = @transform_3, window_bounds = array<i64: 1, 110, 32>}]} {
    %cst = arith.constant 0.000000e+00 : f32
    %0 = vector.broadcast %cst : f32 to vector<110x32xf32>
    %c0 = arith.constant 0 : index
    %c0_0 = arith.constant 0 : index
    %c0_1 = arith.constant 0 : index
    %1 = vector.load %arg1[%c0, %c0_0, %c0_1] : memref<1x122x64xbf16, #tpu.memory_space<vmem>>, vector<1x110x64xbf16>
    %2 = vector.shape_cast %1 : vector<1x110x64xbf16> to vector<110x64xbf16>
    %c0_2 = arith.constant 0 : index
    %c0_3 = arith.constant 0 : index
    %c0_4 = arith.constant 0 : index
    %3 = vector.load %arg2[%c0_2, %c0_3, %c0_4] : memref<4x64x32xbf16, #tpu.memory_space<vmem>>, vector<1x64x32xbf16>
    %4 = vector.shape_cast %3 : vector<1x64x32xbf16> to vector<64x32xbf16>
    %cst_5 = arith.constant dense<0.000000e+00> : vector<110x32xf32>
    %5 = tpu.matmul %2, %4, %cst_5 {dimension_numbers = #tpu.dot_dimension_numbers<[1], [0], [0], [1], [0, 0, 1, 1], [], []>} : vector<110x64xbf16>, vector<64x32xbf16>, vector<110x32xf32> -> vector<110x32xf32>
    %6 = arith.addf %0, %5 : vector<110x32xf32>
    %c0_6 = arith.constant 0 : index
    %c1 = arith.constant 1 : index
    %c0_7 = arith.constant 0 : index
    %7 = vector.load %arg1[%c0_6, %c1, %c0_7] : memref<1x122x64xbf16, #tpu.memory_space<vmem>>, vector<1x110x64xbf16>
    %8 = vector.shape_cast %7 : vector<1x110x64xbf16> to vector<110x64xbf16>
    %c1_8 = arith.constant 1 : index
    %c0_9 = arith.constant 0 : index
    %c0_10 = arith.constant 0 : index
    %9 = vector.load %arg2[%c1_8, %c0_9, %c0_10] : memref<4x64x32xbf16, #tpu.memory_space<vmem>>, vector<1x64x32xbf16>
    %10 = vector.shape_cast %9 : vector<1x64x32xbf16> to vector<64x32xbf16>
    %cst_11 = arith.constant dense<0.000000e+00> : vector<110x32xf32>
    %11 = tpu.matmul %8, %10, %cst_11 {dimension_numbers = #tpu.dot_dimension_numbers<[1], [0], [0], [1], [0, 0, 1, 1], [], []>} : vector<110x64xbf16>, vector<64x32xbf16>, vector<110x32xf32> -> vector<110x32xf32>
    %12 = arith.addf %6, %11 : vector<110x32xf32>
    %c0_12 = arith.constant 0 : index
    %c11 = arith.constant 11 : index
    %c0_13 = arith.constant 0 : index
    %13 = vector.load %arg1[%c0_12, %c11, %c0_13] : memref<1x122x64xbf16, #tpu.memory_space<vmem>>, vector<1x110x64xbf16>
    %14 = vector.shape_cast %13 : vector<1x110x64xbf16> to vector<110x64xbf16>
    %c2 = arith.constant 2 : index
    %c0_14 = arith.constant 0 : index
    %c0_15 = arith.constant 0 : index
    %15 = vector.load %arg2[%c2, %c0_14, %c0_15] : memref<4x64x32xbf16, #tpu.memory_space<vmem>>, vector<1x64x32xbf16>
    %16 = vector.shape_cast %15 : vector<1x64x32xbf16> to vector<64x32xbf16>
    %cst_16 = arith.constant dense<0.000000e+00> : vector<110x32xf32>
    %17 = tpu.matmul %14, %16, %cst_16 {dimension_numbers = #tpu.dot_dimension_numbers<[1], [0], [0], [1], [0, 0, 1, 1], [], []>} : vector<110x64xbf16>, vector<64x32xbf16>, vector<110x32xf32> -> vector<110x32xf32>
    %18 = arith.addf %12, %17 : vector<110x32xf32>
    %c0_17 = arith.constant 0 : index
    %c12 = arith.constant 12 : index
    %c0_18 = arith.constant 0 : index
    %19 = vector.load %arg1[%c0_17, %c12, %c0_18] : memref<1x122x64xbf16, #tpu.memory_space<vmem>>, vector<1x110x64xbf16>
    %20 = vector.shape_cast %19 : vector<1x110x64xbf16> to vector<110x64xbf16>
    %c3 = arith.constant 3 : index
    %c0_19 = arith.constant 0 : index
    %c0_20 = arith.constant 0 : index
    %21 = vector.load %arg2[%c3, %c0_19, %c0_20] : memref<4x64x32xbf16, #tpu.memory_space<vmem>>, vector<1x64x32xbf16>
    %22 = vector.shape_cast %21 : vector<1x64x32xbf16> to vector<64x32xbf16>
    %cst_21 = arith.constant dense<0.000000e+00> : vector<110x32xf32>
    %23 = tpu.matmul %20, %22, %cst_21 {dimension_numbers = #tpu.dot_dimension_numbers<[1], [0], [0], [1], [0, 0, 1, 1], [], []>} : vector<110x64xbf16>, vector<64x32xbf16>, vector<110x32xf32> -> vector<110x32xf32>
    %24 = arith.addf %18, %23 : vector<110x32xf32>
    %c0_22 = arith.constant 0 : index
    %c0_23 = arith.constant 0 : index
    %25 = vector.load %arg3[%c0_22, %c0_23] : memref<1x32xf32, #tpu.memory_space<vmem>>, vector<1x32xf32>
    %26 = vector.broadcast %25 : vector<1x32xf32> to vector<110x32xf32>
    %27 = arith.addf %24, %26 : vector<110x32xf32>
    %cst_24 = arith.constant 0.000000e+00 : f32
    %28 = vector.broadcast %cst_24 : f32 to vector<110x32xf32>
    %29 = arith.maximumf %27, %28 : vector<110x32xf32>
    %30 = arith.truncf %29 : vector<110x32xf32> to vector<110x32xbf16>
    %c0_25 = arith.constant 0 : index
    %c0_26 = arith.constant 0 : index
    %c0_27 = arith.constant 0 : index
    %31 = vector.load %arg4[%c0_25, %c0_26, %c0_27] : memref<1x110x32xbf16, #tpu.memory_space<vmem>>, vector<1x110x32xbf16>
    %32 = vector.shape_cast %31 : vector<1x110x32xbf16> to vector<110x32xbf16>
    %33 = vector.shape_cast %30 : vector<110x32xbf16> to vector<1x110x32xbf16>
    tpu.vector_store %arg4[%c0_25, %c0_26, %c0_27], %33 {strides = array<i32>} : memref<1x110x32xbf16, #tpu.memory_space<vmem>>, vector<1x110x32xbf16>,
    return
  }
  func.func @transform_0(%arg0: i32) -> (i32, i32, i32) {
    %c0_i32 = arith.constant 0 : i32
    %c0_i32_0 = arith.constant 0 : i32
    %c0_i32_1 = arith.constant 0 : i32
    return %arg0, %c0_i32, %c0_i32_0 : i32, i32, i32
  }
  func.func @transform_1(%arg0: i32) -> (i32, i32, i32) {
    %c0_i32 = arith.constant 0 : i32
    %c0_i32_0 = arith.constant 0 : i32
    %c0_i32_1 = arith.constant 0 : i32
    %c0_i32_2 = arith.constant 0 : i32
    return %c0_i32, %c0_i32_0, %c0_i32_1 : i32, i32, i32
  }
  func.func @transform_2(%arg0: i32) -> (i32, i32) {
    %c0_i32 = arith.constant 0 : i32
    %c0_i32_0 = arith.constant 0 : i32
    %c0_i32_1 = arith.constant 0 : i32
    return %c0_i32, %c0_i32_0 : i32, i32
  }
  func.func @transform_3(%arg0: i32) -> (i32, i32, i32) {
    %c0_i32 = arith.constant 0 : i32
    %c0_i32_0 = arith.constant 0 : i32
    %c0_i32_1 = arith.constant 0 : i32
    return %arg0, %c0_i32, %c0_i32_0 : i32, i32, i32
  }
}

module attributes {stable_mosaic.version = 11 : i64} {
  func.func @_conv_relu_kernel(%arg0: i32, %arg1: memref<1x26x128xbf16, #tpu.memory_space<vmem>>, %arg2: memref<4x128x64xbf16, #tpu.memory_space<vmem>>, %arg3: memref<1x64xf32, #tpu.memory_space<vmem>>, %arg4: memref<1x20x64xbf16, #tpu.memory_space<vmem>>) attributes {dimension_semantics = [#tpu.dimension_semantics<parallel>], iteration_bounds = array<i64: 2>, scalar_prefetch = 0 : i64, scratch_operands = 0 : i64, tpu.core_type = #tpu.core_type<tc>, window_params = [{transform_indices = @transform_0, window_bounds = array<i64: 1, 26, 128>}, {pipeline_mode = #tpu.pipeline_mode<synchronous>, transform_indices = @transform_1, window_bounds = array<i64: 4, 128, 64>}, {pipeline_mode = #tpu.pipeline_mode<synchronous>, transform_indices = @transform_2, window_bounds = array<i64: 1, 64>}, {transform_indices = @transform_3, window_bounds = array<i64: 1, 20, 64>}]} {
    %cst = arith.constant 0.000000e+00 : f32
    %0 = vector.broadcast %cst : f32 to vector<20x64xf32>
    %c0 = arith.constant 0 : index
    %c0_0 = arith.constant 0 : index
    %c0_1 = arith.constant 0 : index
    %1 = vector.load %arg1[%c0, %c0_0, %c0_1] : memref<1x26x128xbf16, #tpu.memory_space<vmem>>, vector<1x20x128xbf16>
    %2 = vector.shape_cast %1 : vector<1x20x128xbf16> to vector<20x128xbf16>
    %c0_2 = arith.constant 0 : index
    %c0_3 = arith.constant 0 : index
    %c0_4 = arith.constant 0 : index
    %3 = vector.load %arg2[%c0_2, %c0_3, %c0_4] : memref<4x128x64xbf16, #tpu.memory_space<vmem>>, vector<1x128x64xbf16>
    %4 = vector.shape_cast %3 : vector<1x128x64xbf16> to vector<128x64xbf16>
    %cst_5 = arith.constant dense<0.000000e+00> : vector<20x64xf32>
    %5 = tpu.matmul %2, %4, %cst_5 {dimension_numbers = #tpu.dot_dimension_numbers<[1], [0], [0], [1], [0, 0, 1, 1], [], []>} : vector<20x128xbf16>, vector<128x64xbf16>, vector<20x64xf32> -> vector<20x64xf32>
    %6 = arith.addf %0, %5 : vector<20x64xf32>
    %c0_6 = arith.constant 0 : index
    %c1 = arith.constant 1 : index
    %c0_7 = arith.constant 0 : index
    %7 = vector.load %arg1[%c0_6, %c1, %c0_7] : memref<1x26x128xbf16, #tpu.memory_space<vmem>>, vector<1x20x128xbf16>
    %8 = vector.shape_cast %7 : vector<1x20x128xbf16> to vector<20x128xbf16>
    %c1_8 = arith.constant 1 : index
    %c0_9 = arith.constant 0 : index
    %c0_10 = arith.constant 0 : index
    %9 = vector.load %arg2[%c1_8, %c0_9, %c0_10] : memref<4x128x64xbf16, #tpu.memory_space<vmem>>, vector<1x128x64xbf16>
    %10 = vector.shape_cast %9 : vector<1x128x64xbf16> to vector<128x64xbf16>
    %cst_11 = arith.constant dense<0.000000e+00> : vector<20x64xf32>
    %11 = tpu.matmul %8, %10, %cst_11 {dimension_numbers = #tpu.dot_dimension_numbers<[1], [0], [0], [1], [0, 0, 1, 1], [], []>} : vector<20x128xbf16>, vector<128x64xbf16>, vector<20x64xf32> -> vector<20x64xf32>
    %12 = arith.addf %6, %11 : vector<20x64xf32>
    %c0_12 = arith.constant 0 : index
    %c5 = arith.constant 5 : index
    %c0_13 = arith.constant 0 : index
    %13 = vector.load %arg1[%c0_12, %c5, %c0_13] : memref<1x26x128xbf16, #tpu.memory_space<vmem>>, vector<1x20x128xbf16>
    %14 = vector.shape_cast %13 : vector<1x20x128xbf16> to vector<20x128xbf16>
    %c2 = arith.constant 2 : index
    %c0_14 = arith.constant 0 : index
    %c0_15 = arith.constant 0 : index
    %15 = vector.load %arg2[%c2, %c0_14, %c0_15] : memref<4x128x64xbf16, #tpu.memory_space<vmem>>, vector<1x128x64xbf16>
    %16 = vector.shape_cast %15 : vector<1x128x64xbf16> to vector<128x64xbf16>
    %cst_16 = arith.constant dense<0.000000e+00> : vector<20x64xf32>
    %17 = tpu.matmul %14, %16, %cst_16 {dimension_numbers = #tpu.dot_dimension_numbers<[1], [0], [0], [1], [0, 0, 1, 1], [], []>} : vector<20x128xbf16>, vector<128x64xbf16>, vector<20x64xf32> -> vector<20x64xf32>
    %18 = arith.addf %12, %17 : vector<20x64xf32>
    %c0_17 = arith.constant 0 : index
    %c6 = arith.constant 6 : index
    %c0_18 = arith.constant 0 : index
    %19 = vector.load %arg1[%c0_17, %c6, %c0_18] : memref<1x26x128xbf16, #tpu.memory_space<vmem>>, vector<1x20x128xbf16>
    %20 = vector.shape_cast %19 : vector<1x20x128xbf16> to vector<20x128xbf16>
    %c3 = arith.constant 3 : index
    %c0_19 = arith.constant 0 : index
    %c0_20 = arith.constant 0 : index
    %21 = vector.load %arg2[%c3, %c0_19, %c0_20] : memref<4x128x64xbf16, #tpu.memory_space<vmem>>, vector<1x128x64xbf16>
    %22 = vector.shape_cast %21 : vector<1x128x64xbf16> to vector<128x64xbf16>
    %cst_21 = arith.constant dense<0.000000e+00> : vector<20x64xf32>
    %23 = tpu.matmul %20, %22, %cst_21 {dimension_numbers = #tpu.dot_dimension_numbers<[1], [0], [0], [1], [0, 0, 1, 1], [], []>} : vector<20x128xbf16>, vector<128x64xbf16>, vector<20x64xf32> -> vector<20x64xf32>
    %24 = arith.addf %18, %23 : vector<20x64xf32>
    %c0_22 = arith.constant 0 : index
    %c0_23 = arith.constant 0 : index
    %25 = vector.load %arg3[%c0_22, %c0_23] : memref<1x64xf32, #tpu.memory_space<vmem>>, vector<1x64xf32>
    %26 = vector.broadcast %25 : vector<1x64xf32> to vector<20x64xf32>
    %27 = arith.addf %24, %26 : vector<20x64xf32>
    %cst_24 = arith.constant 0.000000e+00 : f32
    %28 = vector.broadcast %cst_24 : f32 to vector<20x64xf32>
    %29 = arith.maximumf %27, %28 : vector<20x64xf32>
    %30 = arith.truncf %29 : vector<20x64xf32> to vector<20x64xbf16>
    %c0_25 = arith.constant 0 : index
    %c0_26 = arith.constant 0 : index
    %c0_27 = arith.constant 0 : index
    %31 = vector.load %arg4[%c0_25, %c0_26, %c0_27] : memref<1x20x64xbf16, #tpu.memory_space<vmem>>, vector<1x20x64xbf16>
    %32 = vector.shape_cast %31 : vector<1x20x64xbf16> to vector<20x64xbf16>
    %33 = vector.shape_cast %30 : vector<20x64xbf16> to vector<1x20x64xbf16>
    tpu.vector_store %arg4[%c0_25, %c0_26, %c0_27], %33 {strides = array<i32>} : memref<1x20x64xbf16, #tpu.memory_space<vmem>>, vector<1x20x64xbf16>,
    return
  }
  func.func @transform_0(%arg0: i32) -> (i32, i32, i32) {
    %c0_i32 = arith.constant 0 : i32
    %c0_i32_0 = arith.constant 0 : i32
    %c0_i32_1 = arith.constant 0 : i32
    return %arg0, %c0_i32, %c0_i32_0 : i32, i32, i32
  }
  func.func @transform_1(%arg0: i32) -> (i32, i32, i32) {
    %c0_i32 = arith.constant 0 : i32
    %c0_i32_0 = arith.constant 0 : i32
    %c0_i32_1 = arith.constant 0 : i32
    %c0_i32_2 = arith.constant 0 : i32
    return %c0_i32, %c0_i32_0, %c0_i32_1 : i32, i32, i32
  }
  func.func @transform_2(%arg0: i32) -> (i32, i32) {
    %c0_i32 = arith.constant 0 : i32
    %c0_i32_0 = arith.constant 0 : i32
    %c0_i32_1 = arith.constant 0 : i32
    return %c0_i32, %c0_i32_0 : i32, i32
  }
  func.func @transform_3(%arg0: i32) -> (i32, i32, i32) {
    %c0_i32 = arith.constant 0 : i32
    %c0_i32_0 = arith.constant 0 : i32
    %c0_i32_1 = arith.constant 0 : i32
    return %arg0, %c0_i32, %c0_i32_0 : i32, i32, i32
  }
}

module attributes {stable_mosaic.version = 11 : i64} {
  func.func @_conv_relu_kernel(%arg0: i32, %arg1: memref<1x18x64xbf16, #tpu.memory_space<vmem>>, %arg2: memref<9x64x64xbf16, #tpu.memory_space<vmem>>, %arg3: memref<1x64xf32, #tpu.memory_space<vmem>>, %arg4: memref<1x8x64xbf16, #tpu.memory_space<vmem>>) attributes {dimension_semantics = [#tpu.dimension_semantics<parallel>], iteration_bounds = array<i64: 2>, scalar_prefetch = 0 : i64, scratch_operands = 0 : i64, tpu.core_type = #tpu.core_type<tc>, window_params = [{transform_indices = @transform_0, window_bounds = array<i64: 1, 18, 64>}, {pipeline_mode = #tpu.pipeline_mode<synchronous>, transform_indices = @transform_1, window_bounds = array<i64: 9, 64, 64>}, {pipeline_mode = #tpu.pipeline_mode<synchronous>, transform_indices = @transform_2, window_bounds = array<i64: 1, 64>}, {transform_indices = @transform_3, window_bounds = array<i64: 1, 8, 64>}]} {
    %cst = arith.constant 0.000000e+00 : f32
    %0 = vector.broadcast %cst : f32 to vector<8x64xf32>
    %c0 = arith.constant 0 : index
    %c0_0 = arith.constant 0 : index
    %c0_1 = arith.constant 0 : index
    %1 = vector.load %arg1[%c0, %c0_0, %c0_1] : memref<1x18x64xbf16, #tpu.memory_space<vmem>>, vector<1x8x64xbf16>
    %2 = vector.shape_cast %1 : vector<1x8x64xbf16> to vector<8x64xbf16>
    %c0_2 = arith.constant 0 : index
    %c0_3 = arith.constant 0 : index
    %c0_4 = arith.constant 0 : index
    %3 = vector.load %arg2[%c0_2, %c0_3, %c0_4] : memref<9x64x64xbf16, #tpu.memory_space<vmem>>, vector<1x64x64xbf16>
    %4 = vector.shape_cast %3 : vector<1x64x64xbf16> to vector<64x64xbf16>
    %cst_5 = arith.constant dense<0.000000e+00> : vector<8x64xf32>
    %5 = tpu.matmul %2, %4, %cst_5 {dimension_numbers = #tpu.dot_dimension_numbers<[1], [0], [0], [1], [0, 0, 1, 1], [], []>} : vector<8x64xbf16>, vector<64x64xbf16>, vector<8x64xf32> -> vector<8x64xf32>
    %6 = arith.addf %0, %5 : vector<8x64xf32>
    %c0_6 = arith.constant 0 : index
    %c1 = arith.constant 1 : index
    %c0_7 = arith.constant 0 : index
    %7 = vector.load %arg1[%c0_6, %c1, %c0_7] : memref<1x18x64xbf16, #tpu.memory_space<vmem>>, vector<1x8x64xbf16>
    %8 = vector.shape_cast %7 : vector<1x8x64xbf16> to vector<8x64xbf16>
    %c1_8 = arith.constant 1 : index
    %c0_9 = arith.constant 0 : index
    %c0_10 = arith.constant 0 : index
    %9 = vector.load %arg2[%c1_8, %c0_9, %c0_10] : memref<9x64x64xbf16, #tpu.memory_space<vmem>>, vector<1x64x64xbf16>
    %10 = vector.shape_cast %9 : vector<1x64x64xbf16> to vector<64x64xbf16>
    %cst_11 = arith.constant dense<0.000000e+00> : vector<8x64xf32>
    %11 = tpu.matmul %8, %10, %cst_11 {dimension_numbers = #tpu.dot_dimension_numbers<[1], [0], [0], [1], [0, 0, 1, 1], [], []>} : vector<8x64xbf16>, vector<64x64xbf16>, vector<8x64xf32> -> vector<8x64xf32>
    %12 = arith.addf %6, %11 : vector<8x64xf32>
    %c0_12 = arith.constant 0 : index
    %c2 = arith.constant 2 : index
    %c0_13 = arith.constant 0 : index
    %13 = vector.load %arg1[%c0_12, %c2, %c0_13] : memref<1x18x64xbf16, #tpu.memory_space<vmem>>, vector<1x8x64xbf16>
    %14 = vector.shape_cast %13 : vector<1x8x64xbf16> to vector<8x64xbf16>
    %c2_14 = arith.constant 2 : index
    %c0_15 = arith.constant 0 : index
    %c0_16 = arith.constant 0 : index
    %15 = vector.load %arg2[%c2_14, %c0_15, %c0_16] : memref<9x64x64xbf16, #tpu.memory_space<vmem>>, vector<1x64x64xbf16>
    %16 = vector.shape_cast %15 : vector<1x64x64xbf16> to vector<64x64xbf16>
    %cst_17 = arith.constant dense<0.000000e+00> : vector<8x64xf32>
    %17 = tpu.matmul %14, %16, %cst_17 {dimension_numbers = #tpu.dot_dimension_numbers<[1], [0], [0], [1], [0, 0, 1, 1], [], []>} : vector<8x64xbf16>, vector<64x64xbf16>, vector<8x64xf32> -> vector<8x64xf32>
    %18 = arith.addf %12, %17 : vector<8x64xf32>
    %c0_18 = arith.constant 0 : index
    %c4 = arith.constant 4 : index
    %c0_19 = arith.constant 0 : index
    %19 = vector.load %arg1[%c0_18, %c4, %c0_19] : memref<1x18x64xbf16, #tpu.memory_space<vmem>>, vector<1x8x64xbf16>
    %20 = vector.shape_cast %19 : vector<1x8x64xbf16> to vector<8x64xbf16>
    %c3 = arith.constant 3 : index
    %c0_20 = arith.constant 0 : index
    %c0_21 = arith.constant 0 : index
    %21 = vector.load %arg2[%c3, %c0_20, %c0_21] : memref<9x64x64xbf16, #tpu.memory_space<vmem>>, vector<1x64x64xbf16>
    %22 = vector.shape_cast %21 : vector<1x64x64xbf16> to vector<64x64xbf16>
    %cst_22 = arith.constant dense<0.000000e+00> : vector<8x64xf32>
    %23 = tpu.matmul %20, %22, %cst_22 {dimension_numbers = #tpu.dot_dimension_numbers<[1], [0], [0], [1], [0, 0, 1, 1], [], []>} : vector<8x64xbf16>, vector<64x64xbf16>, vector<8x64xf32> -> vector<8x64xf32>
    %24 = arith.addf %18, %23 : vector<8x64xf32>
    %c0_23 = arith.constant 0 : index
    %c5 = arith.constant 5 : index
    %c0_24 = arith.constant 0 : index
    %25 = vector.load %arg1[%c0_23, %c5, %c0_24] : memref<1x18x64xbf16, #tpu.memory_space<vmem>>, vector<1x8x64xbf16>
    %26 = vector.shape_cast %25 : vector<1x8x64xbf16> to vector<8x64xbf16>
    %c4_25 = arith.constant 4 : index
    %c0_26 = arith.constant 0 : index
    %c0_27 = arith.constant 0 : index
    %27 = vector.load %arg2[%c4_25, %c0_26, %c0_27] : memref<9x64x64xbf16, #tpu.memory_space<vmem>>, vector<1x64x64xbf16>
    %28 = vector.shape_cast %27 : vector<1x64x64xbf16> to vector<64x64xbf16>
    %cst_28 = arith.constant dense<0.000000e+00> : vector<8x64xf32>
    %29 = tpu.matmul %26, %28, %cst_28 {dimension_numbers = #tpu.dot_dimension_numbers<[1], [0], [0], [1], [0, 0, 1, 1], [], []>} : vector<8x64xbf16>, vector<64x64xbf16>, vector<8x64xf32> -> vector<8x64xf32>
    %30 = arith.addf %24, %29 : vector<8x64xf32>
    %c0_29 = arith.constant 0 : index
    %c6 = arith.constant 6 : index
    %c0_30 = arith.constant 0 : index
    %31 = vector.load %arg1[%c0_29, %c6, %c0_30] : memref<1x18x64xbf16, #tpu.memory_space<vmem>>, vector<1x8x64xbf16>
    %32 = vector.shape_cast %31 : vector<1x8x64xbf16> to vector<8x64xbf16>
    %c5_31 = arith.constant 5 : index
    %c0_32 = arith.constant 0 : index
    %c0_33 = arith.constant 0 : index
    %33 = vector.load %arg2[%c5_31, %c0_32, %c0_33] : memref<9x64x64xbf16, #tpu.memory_space<vmem>>, vector<1x64x64xbf16>
    %34 = vector.shape_cast %33 : vector<1x64x64xbf16> to vector<64x64xbf16>
    %cst_34 = arith.constant dense<0.000000e+00> : vector<8x64xf32>
    %35 = tpu.matmul %32, %34, %cst_34 {dimension_numbers = #tpu.dot_dimension_numbers<[1], [0], [0], [1], [0, 0, 1, 1], [], []>} : vector<8x64xbf16>, vector<64x64xbf16>, vector<8x64xf32> -> vector<8x64xf32>
    %36 = arith.addf %30, %35 : vector<8x64xf32>
    %c0_35 = arith.constant 0 : index
    %c8 = arith.constant 8 : index
    %c0_36 = arith.constant 0 : index
    %37 = vector.load %arg1[%c0_35, %c8, %c0_36] : memref<1x18x64xbf16, #tpu.memory_space<vmem>>, vector<1x8x64xbf16>
    %38 = vector.shape_cast %37 : vector<1x8x64xbf16> to vector<8x64xbf16>
    %c6_37 = arith.constant 6 : index
    %c0_38 = arith.constant 0 : index
    %c0_39 = arith.constant 0 : index
    %39 = vector.load %arg2[%c6_37, %c0_38, %c0_39] : memref<9x64x64xbf16, #tpu.memory_space<vmem>>, vector<1x64x64xbf16>
    %40 = vector.shape_cast %39 : vector<1x64x64xbf16> to vector<64x64xbf16>
    %cst_40 = arith.constant dense<0.000000e+00> : vector<8x64xf32>
    %41 = tpu.matmul %38, %40, %cst_40 {dimension_numbers = #tpu.dot_dimension_numbers<[1], [0], [0], [1], [0, 0, 1, 1], [], []>} : vector<8x64xbf16>, vector<64x64xbf16>, vector<8x64xf32> -> vector<8x64xf32>
    %42 = arith.addf %36, %41 : vector<8x64xf32>
    %c0_41 = arith.constant 0 : index
    %c9 = arith.constant 9 : index
    %c0_42 = arith.constant 0 : index
    %43 = vector.load %arg1[%c0_41, %c9, %c0_42] : memref<1x18x64xbf16, #tpu.memory_space<vmem>>, vector<1x8x64xbf16>
    %44 = vector.shape_cast %43 : vector<1x8x64xbf16> to vector<8x64xbf16>
    %c7 = arith.constant 7 : index
    %c0_43 = arith.constant 0 : index
    %c0_44 = arith.constant 0 : index
    %45 = vector.load %arg2[%c7, %c0_43, %c0_44] : memref<9x64x64xbf16, #tpu.memory_space<vmem>>, vector<1x64x64xbf16>
    %46 = vector.shape_cast %45 : vector<1x64x64xbf16> to vector<64x64xbf16>
    %cst_45 = arith.constant dense<0.000000e+00> : vector<8x64xf32>
    %47 = tpu.matmul %44, %46, %cst_45 {dimension_numbers = #tpu.dot_dimension_numbers<[1], [0], [0], [1], [0, 0, 1, 1], [], []>} : vector<8x64xbf16>, vector<64x64xbf16>, vector<8x64xf32> -> vector<8x64xf32>
    %48 = arith.addf %42, %47 : vector<8x64xf32>
    %c0_46 = arith.constant 0 : index
    %c10 = arith.constant 10 : index
    %c0_47 = arith.constant 0 : index
    %49 = vector.load %arg1[%c0_46, %c10, %c0_47] : memref<1x18x64xbf16, #tpu.memory_space<vmem>>, vector<1x8x64xbf16>
    %50 = vector.shape_cast %49 : vector<1x8x64xbf16> to vector<8x64xbf16>
    %c8_48 = arith.constant 8 : index
    %c0_49 = arith.constant 0 : index
    %c0_50 = arith.constant 0 : index
    %51 = vector.load %arg2[%c8_48, %c0_49, %c0_50] : memref<9x64x64xbf16, #tpu.memory_space<vmem>>, vector<1x64x64xbf16>
    %52 = vector.shape_cast %51 : vector<1x64x64xbf16> to vector<64x64xbf16>
    %cst_51 = arith.constant dense<0.000000e+00> : vector<8x64xf32>
    %53 = tpu.matmul %50, %52, %cst_51 {dimension_numbers = #tpu.dot_dimension_numbers<[1], [0], [0], [1], [0, 0, 1, 1], [], []>} : vector<8x64xbf16>, vector<64x64xbf16>, vector<8x64xf32> -> vector<8x64xf32>
    %54 = arith.addf %48, %53 : vector<8x64xf32>
    %c0_52 = arith.constant 0 : index
    %c0_53 = arith.constant 0 : index
    %55 = vector.load %arg3[%c0_52, %c0_53] : memref<1x64xf32, #tpu.memory_space<vmem>>, vector<1x64xf32>
    %56 = vector.broadcast %55 : vector<1x64xf32> to vector<8x64xf32>
    %57 = arith.addf %54, %56 : vector<8x64xf32>
    %cst_54 = arith.constant 0.000000e+00 : f32
    %58 = vector.broadcast %cst_54 : f32 to vector<8x64xf32>
    %59 = arith.maximumf %57, %58 : vector<8x64xf32>
    %60 = arith.truncf %59 : vector<8x64xf32> to vector<8x64xbf16>
    %c0_55 = arith.constant 0 : index
    %c0_56 = arith.constant 0 : index
    %c0_57 = arith.constant 0 : index
    %61 = vector.load %arg4[%c0_55, %c0_56, %c0_57] : memref<1x8x64xbf16, #tpu.memory_space<vmem>>, vector<1x8x64xbf16>
    %62 = vector.shape_cast %61 : vector<1x8x64xbf16> to vector<8x64xbf16>
    %63 = vector.shape_cast %60 : vector<8x64xbf16> to vector<1x8x64xbf16>
    tpu.vector_store %arg4[%c0_55, %c0_56, %c0_57], %63 {strides = array<i32>} : memref<1x8x64xbf16, #tpu.memory_space<vmem>>, vector<1x8x64xbf16>,
    return
  }
  func.func @transform_0(%arg0: i32) -> (i32, i32, i32) {
    %c0_i32 = arith.constant 0 : i32
    %c0_i32_0 = arith.constant 0 : i32
    %c0_i32_1 = arith.constant 0 : i32
    return %arg0, %c0_i32, %c0_i32_0 : i32, i32, i32
  }
  func.func @transform_1(%arg0: i32) -> (i32, i32, i32) {
    %c0_i32 = arith.constant 0 : i32
    %c0_i32_0 = arith.constant 0 : i32
    %c0_i32_1 = arith.constant 0 : i32
    %c0_i32_2 = arith.constant 0 : i32
    return %c0_i32, %c0_i32_0, %c0_i32_1 : i32, i32, i32
  }
  func.func @transform_2(%arg0: i32) -> (i32, i32) {
    %c0_i32 = arith.constant 0 : i32
    %c0_i32_0 = arith.constant 0 : i32
    %c0_i32_1 = arith.constant 0 : i32
    return %c0_i32, %c0_i32_0 : i32, i32
  }
  func.func @transform_3(%arg0: i32) -> (i32, i32, i32) {
    %c0_i32 = arith.constant 0 : i32
    %c0_i32_0 = arith.constant 0 : i32
    %c0_i32_1 = arith.constant 0 : i32
    return %arg0, %c0_i32, %c0_i32_0 : i32, i32, i32
  }
}

module attributes {stable_mosaic.version = 11 : i64} {
  func.func @_mlp3_kernel(%arg0: i32, %arg1: memref<2x256xbf16, #tpu.memory_space<vmem>>, %arg2: memref<256x128xbf16, #tpu.memory_space<vmem>>, %arg3: memref<1x128xf32, #tpu.memory_space<vmem>>, %arg4: memref<128x256xbf16, #tpu.memory_space<vmem>>, %arg5: memref<1x256xf32, #tpu.memory_space<vmem>>, %arg6: memref<256x128xbf16, #tpu.memory_space<vmem>>, %arg7: memref<1x128xf32, #tpu.memory_space<vmem>>, %arg8: memref<2x128xf32, #tpu.memory_space<vmem>>) attributes {dimension_semantics = [#tpu.dimension_semantics<parallel>], iteration_bounds = array<i64: 1>, scalar_prefetch = 0 : i64, scratch_operands = 0 : i64, tpu.core_type = #tpu.core_type<tc>, window_params = [{transform_indices = @transform_0, window_bounds = array<i64: 2, 256>}, {pipeline_mode = #tpu.pipeline_mode<synchronous>, transform_indices = @transform_1, window_bounds = array<i64: 256, 128>}, {pipeline_mode = #tpu.pipeline_mode<synchronous>, transform_indices = @transform_2, window_bounds = array<i64: 1, 128>}, {pipeline_mode = #tpu.pipeline_mode<synchronous>, transform_indices = @transform_3, window_bounds = array<i64: 128, 256>}, {pipeline_mode = #tpu.pipeline_mode<synchronous>, transform_indices = @transform_4, window_bounds = array<i64: 1, 256>}, {pipeline_mode = #tpu.pipeline_mode<synchronous>, transform_indices = @transform_5, window_bounds = array<i64: 256, 128>}, {pipeline_mode = #tpu.pipeline_mode<synchronous>, transform_indices = @transform_6, window_bounds = array<i64: 1, 128>}, {transform_indices = @transform_7, window_bounds = array<i64: 2, 128>}]} {
    %c0 = arith.constant 0 : index
    %c0_0 = arith.constant 0 : index
    %0 = vector.load %arg1[%c0, %c0_0] : memref<2x256xbf16, #tpu.memory_space<vmem>>, vector<2x256xbf16>
    %c0_1 = arith.constant 0 : index
    %c0_2 = arith.constant 0 : index
    %1 = vector.load %arg2[%c0_1, %c0_2] : memref<256x128xbf16, #tpu.memory_space<vmem>>, vector<256x128xbf16>
    %cst = arith.constant dense<0.000000e+00> : vector<2x128xf32>
    %2 = tpu.matmul %0, %1, %cst {dimension_numbers = #tpu.dot_dimension_numbers<[1], [0], [0], [1], [0, 0, 1, 1], [], []>} : vector<2x256xbf16>, vector<256x128xbf16>, vector<2x128xf32> -> vector<2x128xf32>
    %c0_3 = arith.constant 0 : index
    %c0_4 = arith.constant 0 : index
    %3 = vector.load %arg3[%c0_3, %c0_4] : memref<1x128xf32, #tpu.memory_space<vmem>>, vector<1x128xf32>
    %4 = vector.broadcast %3 : vector<1x128xf32> to vector<2x128xf32>
    %5 = arith.addf %2, %4 : vector<2x128xf32>
    %cst_5 = arith.constant 0.000000e+00 : f32
    %6 = vector.broadcast %cst_5 : f32 to vector<2x128xf32>
    %7 = arith.maximumf %5, %6 : vector<2x128xf32>
    %8 = arith.truncf %7 : vector<2x128xf32> to vector<2x128xbf16>
    %c0_6 = arith.constant 0 : index
    %c0_7 = arith.constant 0 : index
    %9 = vector.load %arg4[%c0_6, %c0_7] : memref<128x256xbf16, #tpu.memory_space<vmem>>, vector<128x256xbf16>
    %cst_8 = arith.constant dense<0.000000e+00> : vector<2x256xf32>
    %10 = tpu.matmul %8, %9, %cst_8 {dimension_numbers = #tpu.dot_dimension_numbers<[1], [0], [0], [1], [0, 0, 1, 1], [], []>} : vector<2x128xbf16>, vector<128x256xbf16>, vector<2x256xf32> -> vector<2x256xf32>
    %c0_9 = arith.constant 0 : index
    %c0_10 = arith.constant 0 : index
    %11 = vector.load %arg5[%c0_9, %c0_10] : memref<1x256xf32, #tpu.memory_space<vmem>>, vector<1x256xf32>
    %12 = vector.broadcast %11 : vector<1x256xf32> to vector<2x256xf32>
    %13 = arith.addf %10, %12 : vector<2x256xf32>
    %cst_11 = arith.constant 0.000000e+00 : f32
    %14 = vector.broadcast %cst_11 : f32 to vector<2x256xf32>
    %15 = arith.maximumf %13, %14 : vector<2x256xf32>
    %16 = arith.truncf %15 : vector<2x256xf32> to vector<2x256xbf16>
    %c0_12 = arith.constant 0 : index
    %c0_13 = arith.constant 0 : index
    %17 = vector.load %arg6[%c0_12, %c0_13] : memref<256x128xbf16, #tpu.memory_space<vmem>>, vector<256x128xbf16>
    %cst_14 = arith.constant dense<0.000000e+00> : vector<2x128xf32>
    %18 = tpu.matmul %16, %17, %cst_14 {dimension_numbers = #tpu.dot_dimension_numbers<[1], [0], [0], [1], [0, 0, 1, 1], [], []>} : vector<2x256xbf16>, vector<256x128xbf16>, vector<2x128xf32> -> vector<2x128xf32>
    %c0_15 = arith.constant 0 : index
    %c0_16 = arith.constant 0 : index
    %19 = vector.load %arg7[%c0_15, %c0_16] : memref<1x128xf32, #tpu.memory_space<vmem>>, vector<1x128xf32>
    %20 = vector.broadcast %19 : vector<1x128xf32> to vector<2x128xf32>
    %21 = arith.addf %18, %20 : vector<2x128xf32>
    %c0_17 = arith.constant 0 : index
    %c0_18 = arith.constant 0 : index
    %22 = vector.load %arg8[%c0_17, %c0_18] : memref<2x128xf32, #tpu.memory_space<vmem>>, vector<2x128xf32>
    tpu.vector_store %arg8[%c0_17, %c0_18], %21 {strides = array<i32>} : memref<2x128xf32, #tpu.memory_space<vmem>>, vector<2x128xf32>,
    return
  }
  func.func @transform_0(%arg0: i32) -> (i32, i32) {
    %c0_i32 = arith.constant 0 : i32
    %c0_i32_0 = arith.constant 0 : i32
    return %arg0, %c0_i32 : i32, i32
  }
  func.func @transform_1(%arg0: i32) -> (i32, i32) {
    %c0_i32 = arith.constant 0 : i32
    %c0_i32_0 = arith.constant 0 : i32
    %c0_i32_1 = arith.constant 0 : i32
    return %c0_i32, %c0_i32_0 : i32, i32
  }
  func.func @transform_2(%arg0: i32) -> (i32, i32) {
    %c0_i32 = arith.constant 0 : i32
    %c0_i32_0 = arith.constant 0 : i32
    %c0_i32_1 = arith.constant 0 : i32
    return %c0_i32, %c0_i32_0 : i32, i32
  }
  func.func @transform_3(%arg0: i32) -> (i32, i32) {
    %c0_i32 = arith.constant 0 : i32
    %c0_i32_0 = arith.constant 0 : i32
    %c0_i32_1 = arith.constant 0 : i32
    return %c0_i32, %c0_i32_0 : i32, i32
  }
  func.func @transform_4(%arg0: i32) -> (i32, i32) {
    %c0_i32 = arith.constant 0 : i32
    %c0_i32_0 = arith.constant 0 : i32
    %c0_i32_1 = arith.constant 0 : i32
    return %c0_i32, %c0_i32_0 : i32, i32
  }
  func.func @transform_5(%arg0: i32) -> (i32, i32) {
    %c0_i32 = arith.constant 0 : i32
    %c0_i32_0 = arith.constant 0 : i32
    %c0_i32_1 = arith.constant 0 : i32
    return %c0_i32, %c0_i32_0 : i32, i32
  }
  func.func @transform_6(%arg0: i32) -> (i32, i32) {
    %c0_i32 = arith.constant 0 : i32
    %c0_i32_0 = arith.constant 0 : i32
    %c0_i32_1 = arith.constant 0 : i32
    return %c0_i32, %c0_i32_0 : i32, i32
  }
  func.func @transform_7(%arg0: i32) -> (i32, i32) {
    %c0_i32 = arith.constant 0 : i32
    %c0_i32_0 = arith.constant 0 : i32
    return %arg0, %c0_i32 : i32, i32
  }
}

</mosaic_0001>

<bundles_post_ra>
// kernel: conv_dqn_forward.4
= control target key start
LH: loop header
LB: loop body
LE: loop exit
PB: predicated region body
PF: predicated region fallthrough
CT: control target
= control target key end

     0   :  { %s1565_s12 = smov 0   ;;  %s1895_s0 = inlined_call_operand.vmem [shape: bf16[2,122,64], index: 0, kind: input, shape index: {}]   ;;  %s1896_s1 = inlined_call_operand.vmem [shape: bf16[4,64,32], index: 1, kind: input, shape index: {}]   ;;  %s1897_s2 = inlined_call_operand.vmem [shape: f32[1,32], index: 2, kind: input, shape index: {}]   ;;  %s1898_s3 = inlined_call_operand.vmem [shape: bf16[2,110,32], index: 3, kind: output, shape index: {}]  }
   0x1 LB: > { %s1178_s13 = sadd.s32 4294967295, %s1541_s12   ;;  %p1182_p0 = scmp.ge.s32.totalorder %s1541_s12, 1  ;;  %s1541_s12 = sphi %s1565_s12, %s13_s12  }
   0x2   : > { %p137_p1 = scmp.lt.s32.totalorder %s1541_s12, 3 }
   0x4   : > { %p138_p2 = pnand %p1182_p0, %p137_p1 }
   0x5   : > { %p161_p3 = scmp.lt.s32.totalorder (!%p138_p2), %s1178_s13, 1 }
   0x6   : > { %141 = sbr.rel (%p138_p2) target bundleno = 340 (0x154), region = 32 }
   0xb   : > { %v1502_v0 = vld [vmem:[%s1896_s1 + $0x38] sm:$0xff]   ;;  %v1543_v1 = vmov 0.0   ;;  %v1504_v3 = vld [vmem:[%s1896_s1 + $0x30] sm:$0xff]   ;;  %vm1544_vm0 = vmmov 0   ;;  %s1900_s13 = smov (!%p161_p3, %s1178_s13), 1  ;;  %v1506_v5 = vld [vmem:[%s1896_s1 + $0x28] sm:$0xff]  }
   0xc   : > { %1347 = vmatprep.subr.bf16.mxu0 %v1543_v1  ;;  %1383 = vmatprep.subr.bf16.mxu1 %v1543_v1  ;;  %v1503_v2 = vld [vmem:[%s1896_s1 + $0x18] sm:$0xff]   ;;  %v1505_v4 = vld [vmem:[%s1896_s1 + $0x10] sm:$0xff]   ;;  %s1288_s24 = sshll.u32 %s1900_s13, 6  ;;  %v1507_v6 = vld [vmem:[%s1896_s1 + $0x8] sm:$0xff]   ;;  %vm319_vm1 = vcmask 523264   ;;  %vm852_vm4 = vcmask 1045504  }
   0xd   : > { %1348 = vmatpush3.bf16.msra.mxu0 %v1502_v0  ;;  %1355 = vmatprep.mubr.msk.bf16.mxu0 %vm1544_vm0, %v1543_v1  ;;  %s1606_s29 = scalar_lea.vmem %s1895_s0, %s1288_s24  ;;  %v1508_v9 = vld [vmem:[%s1896_s1 + $0x20] sm:$0xff]   ;;  %vm239_vm2 = vsmask.f32 7424  ;;  %v1512_v18 = vld [vmem:[%s1896_s1 + $0x58] sm:$0xff]   ;;  %v1515_v23 = vld [vmem:[%s1896_s1 + $0x50] sm:$0xff]   ;;  %s1491_s27 = smul.u32 56, %s1900_s13 }
   0xe   : > { %1384 = vmatpush3.bf16.msra.mxu1 %v1503_v2  ;;  %1349 = vmatprep.subr.bf16.mxu0 %v1543_v1  ;;  %v1510_v7 = vld [vmem:[%s1606_s29] sm:$0xff]   ;;  %v1511_v8 = vld [vmem:[%s1606_s29 + $0x8] sm:$0xff]   ;;  %v1514_v16 = vld [vmem:[%s1606_s29 + $0x10] sm:$0xff]   ;;  %vm623_vm3 = vsmask.f32 6400  ;;  %vm1107_vm5 = vcmask 257024  }
   0xf   : > { %1385 = vmatprep.subr.bf16.mxu1 %v1543_v1  ;;  %1391 = vmatprep.mubr.msk.bf16.mxu1 %vm1544_vm0, %v1543_v1  ;;  %v1509_v10 = vld [vmem:[%s1896_s1] sm:$0xff]   ;;  %v241_v11 = vshrl.u32 %v1510_v7, 16  ;;  %v243_v12 = vshll.u32 %v1510_v7, 16  ;;  %v248_v13 = vshll.u32 %v1511_v8, 16  ;;  %v1513_v19 = vld [vmem:[%s1896_s1 + $0x78] sm:$0xff]   ;;  %v252_v20 = vshrl.u32 %v1511_v8, 16  ;;  %s1828_s30 = scalar_lea.vmem %s1898_s3, %s1491_s27 }
  0x10   : > { %v256_v21 = vshll.u32 %v1514_v16, 16  ;;  %v1516_v24 = vld [vmem:[%s1606_s29 + $0x18] sm:$0xff]   ;;  %v1517_v27 = vld [vmem:[%s1896_s1 + $0x70] sm:$0xff]   ;;  %v260_v29 = vshrl.u32 %v1514_v16, 16  ;;  %v1519_v31 = vld [vmem:[%s1896_s1 + $0x48] sm:$0xff]   ;;  %vm1121_vm6 = vcmask 256000  }
  0x11   : > { %1350 = vmatpush3.bf16.msra.mxu0 %v1504_v3  ;;  %v245_v14 = vrot.slane %v243_v12, 1  ;;  %v250_v15 = vrot.slane %v248_v13, 1  ;;  %v264_v30 = vshll.u32 %v1516_v24, 16  ;;  %v1520_v32 = vld [vmem:[%s1896_s1 + $0x68] sm:$0xff]   ;;  %v1518_v35 = vld [vmem:[%s1606_s29 + $0x20] sm:$0xff]   ;;  %v268_v39 = vshrl.u32 %v1516_v24, 16 }
  0x12   : > { %1386 = vmatpush3.bf16.msra.mxu1 %v1505_v4  ;;  %1351 = vmatprep.subr.bf16.mxu0 %v1543_v1  ;;  %v258_v26 = vrot.slane %v256_v21, 1  ;;  %v1523_v36 = vld [vmem:[%s1896_s1 + $0x40] sm:$0xff]   ;;  %v272_v40 = vshll.u32 %v1518_v35, 16  ;;  %v1521_v43 = vld [vmem:[%s1606_s29 + $0x28] sm:$0xff]   ;;  %v276_v45 = vshrl.u32 %v1518_v35, 16 }
  0x13   : > { %1387 = vmatprep.subr.bf16.mxu1 %v1543_v1  ;;  %v246_v17 = vor.u32 %v245_v14, %v241_v11  ;;  %v254_v25 = vor.u32 %v252_v20, %v250_v15  ;;  %v266_v34 = vrot.slane %v264_v30, 1  ;;  %v1524_v37 = vld [vmem:[%s1896_s1 + $0x60] sm:$0xff]   ;;  %v280_v46 = vshll.u32 %v1521_v43, 16  ;;  %v184_v47 = vld [vmem:[%s1606_s29 + $0x30] sm:$0xf] }
  0x14   : > { %v262_v33 = vor.u32 %v260_v29, %v258_v26  ;;  %v274_v42 = vrot.slane %v272_v40, 1  ;;  %v194_v48 = vld [vmem:[%s1606_s29 + $0x34] sm:$0xf]  ;;  %v284_v53 = vshrl.u32 %v1521_v43, 16  ;;  %v561_v57 = vld [vmem:[%s1606_s29 + $0x4] sm:$0xe] }
  0x15   : > { %1352 = vmatpush3.bf16.msra.mxu0 %v1506_v5  ;;  %v251_v22 = vsel %vm239_vm2, %v246_v17, %v250_v15  ;;  %v259_v28 = vsel %vm239_vm2, %v254_v25, %v258_v26  ;;  %v270_v41 = vor.u32 %v268_v39, %v266_v34  ;;  %v282_v50 = vrot.slane %v280_v46, 1  ;;  %v562_v58 = vld [vmem:[%s1606_s29 + $0x8] sm:$0xf]  ;;  %v1527_v59 = vld [vmem:[%s1606_s29 + $0xc] sm:$0xff]   ;;  %v185_v0 = vld [vmem:[%s1606_s29 + $0x34] sm:$0x7] }
  0x16   : > { %1388 = vmatpush3.bf16.msra.mxu1 %v1507_v6  ;;  %1353 = vmatprep.subr.bf16.mxu0 %v1543_v1  ;;  %v267_v38 = vsel %vm239_vm2, %v262_v33, %v266_v34  ;;  %v278_v49 = vor.u32 %v276_v45, %v274_v42  ;;  %v1200_v51 = vcombine.low %v184_v47, %v194_v48  ;;  %v633_v63 = vshrl.u32 %v1527_v59, 16  ;;  %v839_v5 = vld [vmem:[%s1606_s29 + $0x4] sm:$0xc] }
  0x17   : > { %1389 = vmatprep.subr.bf16.mxu1 %v1543_v1  ;;  %v275_v44 = vsel %vm239_vm2, %v270_v41, %v274_v42  ;;  %v286_v55 = vor.u32 %v284_v53, %v282_v50  ;;  %v1232_v61 = vcombine.low %v561_v57, %v562_v58  ;;  %v636_v4 = vshll.u32 %v1527_v59, 16  ;;  %v1531_v33 = vld [vmem:[%s1606_s29 + $0x24] sm:$0xff]   ;;  %v1532_v42 = vld [vmem:[%s1606_s29 + $0x2c] sm:$0xff]  }
  0x18   : > { %v283_v52 = vsel %vm239_vm2, %v278_v49, %v282_v50  ;;  %v288_v54 = vshll.u32 %v1200_v51, 16  ;;  %v292_v62 = vshrl.u32 %v1200_v51, 16  ;;  %v1259_v13 = vcombine.low %v839_v5, %v562_v58  ;;  %v1533_v51 = vld [vmem:[%s1606_s29 + $0x34] sm:$0xff]  }
  0x19   : > { %1354 = vmatpush3.bf16.msra.mxu0 %v1508_v9  ;;  %v625_v2 = vshrl.u32 %v1232_v61, 16  ;;  %v628_v3 = vshll.u32 %v1232_v61, 16  ;;  %v1529_v9 = vld [vmem:[%s1606_s29 + $0x14] sm:$0xff]   ;;  %v638_v12 = vrot.slane %v636_v4, 2  ;;  %v854_v14 = vrot.slane %v1527_v59, 2 }
  0x1a   : > { %1390 = vmatpush3.bf16.msra.mxu1 %v1509_v10  ;;  %1419 = vmatprep.subr.bf16.mxu0 %v1543_v1  ;;  %v290_v56 = vrot.slane %v288_v54, 1  ;;  %v642_v15 = vshrl.u32 %v1529_v9, 16  ;;  %v856_v26 = vrot.slane %v1529_v9, 2  ;;  %v669_v45 = vshrl.u32 %v1532_v42, 16 }
  0x1b   : > { %1455 = vmatprep.subr.bf16.mxu1 %v1543_v1  ;;  %v627_v10 = vrot.slane %v625_v2, 1  ;;  %v630_v11 = vrot.slane %v628_v3, 2  ;;  %v672_v46 = vshll.u32 %v1532_v42, 16  ;;  %v862_v53 = vrot.slane %v1532_v42, 2 }
  0x1c   : > { %1356 = vmatmul.mubr.msk.bf16.vlgmr.msra.gmra.mxu0 %vm319_vm1, %v251_v22  ;;  %v291_v60 = vsel %vm239_vm2, %v286_v55, %v290_v56  ;;  %v294_v6 = vor.u32 %v292_v62, %v290_v56  ;;  %v644_v22 = vrot.slane %v642_v15, 1  ;;  %v857_v30 = vsel %vm852_vm4, %v854_v14, %v856_v26  ;;  %v1534_v62 = vld [vmem:[%s1606_s29 + $0x3c] ss:$0 sps:$4 sm:$0x11]  }
  0x1d   : > { %1392 = vmatmul.mubr.msk.bf16.vlgmr.msra.gmra.mxu1 %vm319_vm1, %v1510_v7  ;;  %1420 = vmatpush3.bf16.msra.mxu0 %v1512_v18  ;;  %v1212_v7 = vcombine.low %v184_v47, %v185_v0  ;;  %v853_v18 = vrot.slane %v1259_v13, 2  ;;  %v671_v49 = vrot.slane %v669_v45, 1  ;;  %v674_v50 = vrot.slane %v672_v46, 2 }
  0x1e   : > { %1456 = vmatpush3.bf16.msra.mxu1 %v1513_v19  ;;  %1359 = vmatprep.mubr.msk.bf16.mxu0 %vm1544_vm0, %v1543_v1  ;;  %v645_v19 = vshll.u32 %v1529_v9, 16  ;;  %v678_v54 = vshrl.u32 %v1533_v51, 16  ;;  %v681_v55 = vshll.u32 %v1533_v51, 16  ;;  %v864_v61 = vrot.slane %v1533_v51, 2 }
  0x1f   : > { %1395 = vmatprep.mubr.msk.bf16.mxu1 %vm1544_vm0, %v1543_v1  ;;  %1421 = vmatprep.subr.bf16.mxu0 %v1543_v1  ;;  %v855_v21 = vsel %vm852_vm4, %v853_v18, %v854_v14  ;;  %v687_v2 = vshll.u32 %v1534_v62, 16  ;;  %v866_v4 = vrot.slane %v1534_v62, 2 }
  0x20   : > { %1457 = vmatprep.subr.bf16.mxu1 %v1543_v1  ;;  %v680_v58 = vrot.slane %v678_v54, 1  ;;  %v683_v59 = vrot.slane %v681_v55, 2  ;;  %v865_v0 = vsel %vm852_vm4, %v862_v53, %v864_v61 }
  0x21   : > { %1422 = vmatpush3.bf16.msra.mxu0 %v1515_v23  ;;  %v647_v23 = vrot.slane %v645_v19, 2  ;;  %v689_v3 = vrot.slane %v687_v2, 2 }
  0x22   : > { %1458 = vmatpush3.bf16.msra.mxu1 %v1517_v27  ;;  %1423 = vmatprep.subr.bf16.mxu0 %v1543_v1 }
  0x23   : > { %1459 = vmatprep.subr.bf16.mxu1 %v1543_v1  ;;  %v648_v25 = vor.u32 %v647_v23, %v644_v22 }
  0x24   : > { %1360 = vmatmul.mubr.msk.bf16.gmra.mxu0 %vm319_vm1, %v259_v28 }
  0x25   : > { %1396 = vmatmul.mubr.msk.bf16.gmra.mxu1 %vm319_vm1, %v1511_v8  ;;  %1363 = vmatprep.mubr.msk.bf16.mxu0 %vm1544_vm0, %v1543_v1  ;;  %v635_v8 = vrot.slane %v633_v63, 1 }
  0x26   : > { %1399 = vmatprep.mubr.msk.bf16.mxu1 %vm1544_vm0, %v1543_v1  ;;  %1424 = vmatpush3.bf16.msra.mxu0 %v1519_v31 }
  0x27   : > { %1460 = vmatpush3.bf16.msra.mxu1 %v1520_v32  ;;  %1425 = vmatprep.subr.bf16.mxu0 %v1543_v1  ;;  %v639_v17 = vor.u32 %v638_v12, %v635_v8 }
  0x28   : > { %1461 = vmatprep.subr.bf16.mxu1 %v1543_v1 }
  0x29   : > { %v649_v29 = vsel %vm623_vm3, %v639_v17, %v648_v25 }
  0x2a   : > { %1426 = vmatpush3.bf16.msra.mxu0 %v1523_v36  ;;  %v660_v36 = vshrl.u32 %v1531_v33, 16 }
  0x2b   : > { %1462 = vmatpush3.bf16.msra.mxu1 %v1524_v37  ;;  %v663_v37 = vshll.u32 %v1531_v33, 16 }
  0x2c   : > { %1364 = vmatmul.mubr.msk.bf16.gmra.mxu0 %vm319_vm1, %v267_v38  ;;  %v662_v40 = vrot.slane %v660_v36, 1 }
  0x2d   : > { %1400 = vmatmul.mubr.msk.bf16.gmra.mxu1 %vm319_vm1, %v1514_v16  ;;  %1367 = vmatprep.mubr.msk.bf16.mxu0 %vm1544_vm0, %v1543_v1  ;;  %v631_v16 = vor.u32 %v630_v11, %v627_v10  ;;  %v665_v41 = vrot.slane %v663_v37, 2 }
  0x2e   : > { %1403 = vmatprep.mubr.msk.bf16.mxu1 %vm1544_vm0, %v1543_v1 }
  0x2f   : > { %v640_v20 = vsel %vm623_vm3, %v631_v16, %v639_v17 }
  0x34   : > { %1368 = vmatmul.mubr.msk.bf16.gmra.mxu0 %vm319_vm1, %v275_v44  ;;  %v860_v44 = vrot.slane %v1531_v33, 2 }
  0x35   : > { %1404 = vmatmul.mubr.msk.bf16.gmra.mxu1 %vm319_vm1, %v1516_v24  ;;  %1371 = vmatprep.mubr.msk.bf16.mxu0 %vm1544_vm0, %v1543_v1  ;;  %v1530_v24 = vld [vmem:[%s1606_s29 + $0x1c] sm:$0xff]  }
  0x36   : > { %1407 = vmatprep.mubr.msk.bf16.mxu1 %vm1544_vm0, %v1543_v1  ;;  %v651_v27 = vshrl.u32 %v1530_v24, 16  ;;  %v654_v28 = vshll.u32 %v1530_v24, 16  ;;  %v863_v57 = vsel %vm852_vm4, %v860_v44, %v862_v53 }
  0x38   : > { %v653_v31 = vrot.slane %v651_v27, 1  ;;  %v656_v32 = vrot.slane %v654_v28, 2 }
  0x3a   : > { %v657_v34 = vor.u32 %v656_v32, %v653_v31 }
  0x3c   : > { %1372 = vmatmul.mubr.msk.bf16.gmra.mxu0 %vm319_vm1, %v283_v52  ;;  %v658_v38 = vsel %vm623_vm3, %v648_v25, %v657_v34  ;;  %v675_v52 = vor.u32 %v674_v50, %v671_v49 }
  0x3d   : > { %1408 = vmatmul.mubr.msk.bf16.gmra.mxu1 %vm319_vm1, %v1518_v35  ;;  %1375 = vmatprep.mubr.msk.bf16.mxu0 %vm1544_vm0, %v1543_v1  ;;  %v858_v35 = vrot.slane %v1530_v24, 2 }
  0x3e   : > { %1411 = vmatprep.mubr.msk.bf16.mxu1 %vm1544_vm0, %v1543_v1 }
  0x3f   : > { %v859_v39 = vsel %vm852_vm4, %v856_v26, %v858_v35  ;;  %v861_v48 = vsel %vm852_vm4, %v858_v35, %v860_v44 }
  0x44   : > { %1376 = vmatmul.mubr.msk.bf16.gmra.mxu0 %vm319_vm1, %v291_v60  ;;  %v684_v60 = vor.u32 %v683_v59, %v680_v58 }
  0x45   : > { %1412 = vmatmul.mubr.msk.bf16.gmra.mxu1 %vm319_vm1, %v1521_v43  ;;  %1379 = vmatprep.mubr.msk.bf16.mxu0 %vm1544_vm0, %v1543_v1  ;;  %v666_v43 = vor.u32 %v665_v41, %v662_v40 }
  0x46   : > { %1415 = vmatprep.mubr.msk.bf16.mxu1 %vm1544_vm0, %v1543_v1  ;;  %v685_v63 = vsel %vm623_vm3, %v675_v52, %v684_v60  ;;  %v690_v5 = vsel %vm623_vm3, %v684_v60, %v689_v3  ;;  %v1819_v3 = vld [vmem:[%s1897_s2] ss:$0 sm:$0xff] }
  0x47   : > { %v667_v47 = vsel %vm623_vm3, %v657_v34, %v666_v43  ;;  %v676_v56 = vsel %vm623_vm3, %v666_v43, %v675_v52 }
  0x4c   : > { %1380 = vmatmul.mubr.msk.bf16.gmra.mxu0 %vm319_vm1, %v294_v6  ;;  %v867_v6 = vsel %vm852_vm4, %v864_v61, %v866_v4 }
  0x4d   : > { %1416 = vmatmul.mubr.msk.bf16.gmra.mxu1 %vm319_vm1, %v1212_v7  ;;  %1427 = vmatprep.mubr.msk.bf16.mxu0 %vm1544_vm0, %v1543_v1 }
  0x4e   : > { %1463 = vmatprep.mubr.msk.bf16.mxu1 %vm1544_vm0, %v1543_v1 }
  0x54   : > { %1428 = vmatmul.mubr.msk.bf16.vlgmr.msra.gmra.mxu0 %vm319_vm1, %v640_v20 }
  0x55   : > { %1464 = vmatmul.mubr.msk.bf16.vlgmr.msra.gmra.mxu1 %vm319_vm1, %v855_v21  ;;  %1431 = vmatprep.mubr.msk.bf16.mxu0 %vm1544_vm0, %v1543_v1 }
  0x56   : > { %1467 = vmatprep.mubr.msk.bf16.mxu1 %vm1544_vm0, %v1543_v1 }
  0x5c   : > { %1432 = vmatmul.mubr.msk.bf16.gmra.mxu0 %vm319_vm1, %v649_v29 }
  0x5d   : > { %1468 = vmatmul.mubr.msk.bf16.gmra.mxu1 %vm319_vm1, %v857_v30  ;;  %1435 = vmatprep.mubr.msk.bf16.mxu0 %vm1544_vm0, %v1543_v1 }
  0x5e   : > { %1471 = vmatprep.mubr.msk.bf16.mxu1 %vm1544_vm0, %v1543_v1 }
  0x64   : > { %1436 = vmatmul.mubr.msk.bf16.gmra.mxu0 %vm319_vm1, %v658_v38 }
  0x65   : > { %1472 = vmatmul.mubr.msk.bf16.gmra.mxu1 %vm319_vm1, %v859_v39  ;;  %1439 = vmatprep.mubr.msk.bf16.mxu0 %vm1544_vm0, %v1543_v1 }
  0x66   : > { %1475 = vmatprep.mubr.msk.bf16.mxu1 %vm1544_vm0, %v1543_v1 }
  0x6c   : > { %1440 = vmatmul.mubr.msk.bf16.gmra.mxu0 %vm319_vm1, %v667_v47 }
  0x6d   : > { %1476 = vmatmul.mubr.msk.bf16.gmra.mxu1 %vm319_vm1, %v861_v48  ;;  %1443 = vmatprep.mubr.msk.bf16.mxu0 %vm1544_vm0, %v1543_v1 }
  0x6e   : > { %1479 = vmatprep.mubr.msk.bf16.mxu1 %vm1544_vm0, %v1543_v1 }
  0x74   : > { %1444 = vmatmul.mubr.msk.bf16.gmra.mxu0 %vm319_vm1, %v676_v56 }
  0x75   : > { %1480 = vmatmul.mubr.msk.bf16.gmra.mxu1 %vm319_vm1, %v863_v57  ;;  %1447 = vmatprep.mubr.msk.bf16.mxu0 %vm1544_vm0, %v1543_v1 }
  0x76   : > { %1483 = vmatprep.mubr.msk.bf16.mxu1 %vm1544_vm0, %v1543_v1 }
  0x7c   : > { %1448 = vmatmul.mubr.msk.bf16.gmra.mxu0 %vm319_vm1, %v685_v63 }
  0x7d   : > { %1484 = vmatmul.mubr.msk.bf16.gmra.mxu1 %vm319_vm1, %v865_v0  ;;  %1451 = vmatprep.mubr.msk.bf16.mxu0 %vm1544_vm0, %v1543_v1 }
  0x7e   : > { %1487 = vmatprep.mubr.msk.bf16.mxu1 %vm1544_vm0, %v1543_v1 }
  0x84   : > { %1452 = vmatmul.mubr.msk.bf16.gmra.mxu0 %vm319_vm1, %v690_v5 }
  0x85   : > { %1488 = vmatmul.mubr.msk.bf16.gmra.mxu1 %vm319_vm1, %v867_v6 }
  0xdc   : > { %v375_v7 = vpop.f32.mrf.mxu0 }
  0xdd   : > { %v506_v8 = vpop.f32.mrf.mxu1 }
  0xde   : > { %v1357_v9 = vpop.f32.mrf.mxu0  ;;  %v507_v62 = vadd.f32 %v506_v8, %v375_v7 }
  0xdf   : > { %v1393_v10 = vpop.f32.mrf.mxu1 }
  0xe0   : > { %v378_v11 = vpop.f32.mrf.mxu0 }
  0xe1   : > { %v509_v12 = vpop.f32.mrf.mxu1 }
  0xe2   : > { %v1358_v13 = vpop.f32.mrf.mxu0  ;;  %v510_v6 = vadd.f32 %v509_v12, %v378_v11 }
  0xe3   : > { %v1394_v14 = vpop.f32.mrf.mxu1 }
  0xe4   : > { %v1768_v15 = vpop.f32.mrf.mxu0 }
  0xe5   : > { %v1770_v1 = vpop.f32.mrf.mxu1 }
  0xe6   : > { %v1361_v16 = vpop.f32.mrf.mxu0  ;;  %v515_v8 = vadd.f32 %v1770_v1, %v1768_v15 }
  0xe7   : > { %v1397_v17 = vpop.f32.mrf.mxu1 }
  0xe8   : > { %v1772_v18 = vpop.f32.mrf.mxu0 }
  0xe9   : > { %v1774_v19 = vpop.f32.mrf.mxu1 }
  0xea   : > { %v1362_v20 = vpop.f32.mrf.mxu0  ;;  %v518_v15 = vadd.f32 %v1774_v19, %v1772_v18 }
  0xeb   : > { %v1398_v21 = vpop.f32.mrf.mxu1 }
  0xec   : > { %v1776_v22 = vpop.f32.mrf.mxu0 }
  0xed   : > { %v1778_v23 = vpop.f32.mrf.mxu1 }
  0xee   : > { %v1365_v24 = vpop.f32.mrf.mxu0 }
  0xef   : > { %v1401_v25 = vpop.f32.mrf.mxu1 }
  0xf0   : > { %v1780_v26 = vpop.f32.mrf.mxu0 }
  0xf1   : > { %v1782_v27 = vpop.f32.mrf.mxu1 }
  0xf2   : > { %v1366_v28 = vpop.f32.mrf.mxu0 }
  0xf3   : > { %v1402_v29 = vpop.f32.mrf.mxu1 }
  0xf4   : > { %v1784_v30 = vpop.f32.mrf.mxu0 }
  0xf5   : > { %v1786_v31 = vpop.f32.mrf.mxu1 }
  0xf6   : > { %v1369_v32 = vpop.f32.mrf.mxu0 }
  0xf7   : > { %v1405_v33 = vpop.f32.mrf.mxu1 }
  0xf8   : > { %v1788_v34 = vpop.f32.mrf.mxu0 }
  0xf9   : > { %v1790_v35 = vpop.f32.mrf.mxu1 }
  0xfa   : > { %v1370_v36 = vpop.f32.mrf.mxu0 }
  0xfb   : > { %v1406_v37 = vpop.f32.mrf.mxu1 }
  0xfc   : > { %v1792_v38 = vpop.f32.mrf.mxu0 }
  0xfd   : > { %v1794_v39 = vpop.f32.mrf.mxu1 }
  0xfe   : > { %v1373_v40 = vpop.f32.mrf.mxu0 }
  0xff   : > { %v1409_v41 = vpop.f32.mrf.mxu1 }
 0x100   : > { %v1796_v42 = vpop.f32.mrf.mxu0 }
 0x101   : > { %v1798_v43 = vpop.f32.mrf.mxu1 }
 0x102   : > { %v1374_v44 = vpop.f32.mrf.mxu0 }
 0x103   : > { %v1410_v45 = vpop.f32.mrf.mxu1 }
 0x104   : > { %v1800_v46 = vpop.f32.mrf.mxu0 }
 0x105   : > { %v1802_v47 = vpop.f32.mrf.mxu1 }
 0x106   : > { %v1377_v48 = vpop.f32.mrf.mxu0 }
 0x107   : > { %v1413_v49 = vpop.f32.mrf.mxu1 }
 0x108   : > { %v1804_v50 = vpop.f32.mrf.mxu0  ;;  %v523_v49 = vadd.f32 %v1778_v23, %v1776_v22 }
 0x109   : > { %v1806_v51 = vpop.f32.mrf.mxu1 }
 0x10a   : > { %v1378_v52 = vpop.f32.mrf.mxu0 }
 0x10b   : > { %v1414_v53 = vpop.f32.mrf.mxu1 }
 0x10c   : > { %v1808_v54 = vpop.f32.mrf.mxu0 }
 0x10d   : > { %v1810_v55 = vpop.f32.mrf.mxu1 }
 0x10e   : > { %v1381_v56 = vpop.f32.mrf.mxu0 }
 0x10f   : > { %v1417_v57 = vpop.f32.mrf.mxu1 }
 0x110   : > { %v1812_v58 = vpop.f32.mrf.mxu0 }
 0x111   : > { %v1814_v59 = vpop.f32.mrf.mxu1 }
 0x112   : > { %v1382_v60 = vpop.f32.mrf.mxu0 }
 0x113   : > { %v1418_v61 = vpop.f32.mrf.mxu1 }
 0x114   : > { %v770_v63 = vpop.f32.mrf.mxu0 }
 0x115   : > { %v947_v0 = vpop.f32.mrf.mxu1  ;;  %v825_v2 = vadd.f32 %v770_v63, %v507_v62  ;;  %v526_v63 = vadd.f32 %v1782_v27, %v1780_v26 }
 0x116   : > { %v1429_v4 = vpop.f32.mrf.mxu0 }
 0x117   : > { %v1465_v5 = vpop.f32.mrf.mxu1  ;;  %v1002_v9 = vadd.f32 %v947_v0, %v825_v2 }
 0x118   : > { %v773_v10 = vpop.f32.mrf.mxu0 }
 0x119   : > { %v950_v13 = vpop.f32.mrf.mxu1  ;;  %v1023_v14 = vadd.f32 %v1819_v3, %v1002_v9  ;;  %v826_v16 = vadd.f32 %v773_v10, %v510_v6 }
 0x11a   : > { %v1430_v17 = vpop.f32.mrf.mxu0 }
 0x11b   : > { %v1466_v7 = vpop.f32.mrf.mxu1  ;;  %v1037_v20 = vmax.f32 %v1023_v14, 0.0  ;;  %v1003_v21 = vadd.f32 %v950_v13, %v826_v16  ;;  %v531_v13 = vadd.f32 %v1786_v31, %v1784_v30 }
 0x11c   : > { %v778_v11 = vpop.f32.mrf.mxu0 }
 0x11d   : > { %v955_v12 = vpop.f32.mrf.mxu1  ;;  %v1289_v24 = vpack.c.bf16 %v1037_v20, %v1037_v20  ;;  %v1024_v25 = vadd.f32 %v1819_v3, %v1003_v21  ;;  %v827_v28 = vadd.f32 %v778_v11, %v515_v8  ;;  %v534_v11 = vadd.f32 %v1790_v35, %v1788_v34 }
 0x11e   : > { %v1433_v29 = vpop.f32.mrf.mxu0 }
 0x11f   : > { %v1469_v32 = vpop.f32.mrf.mxu1  ;;  %1108 = vst.msk [vmem:[%s1828_s30] sm:$0xf] %vm1107_vm5, %v1289_v24  ;;  %v1038_v1 = vmax.f32 %v1024_v25, 0.0  ;;  %v1004_v33 = vadd.f32 %v955_v12, %v827_v28 }
 0x120   : > { %v781_v36 = vpop.f32.mrf.mxu0 }
 0x121   : > { %v958_v37 = vpop.f32.mrf.mxu1  ;;  %v1290_v40 = vpack.c.bf16 %v1038_v1, %v1038_v1  ;;  %v1025_v41 = vadd.f32 %v1819_v3, %v1004_v33  ;;  %v828_v44 = vadd.f32 %v781_v36, %v518_v15  ;;  %v539_v1 = vadd.f32 %v1794_v39, %v1792_v38 }
 0x122   : > { %v1434_v45 = vpop.f32.mrf.mxu0 }
 0x123   : > { %v1470_v48 = vpop.f32.mrf.mxu1  ;;  %1109 = vst.msk [vmem:[%s1828_s30 + $0x4] sm:$0xf] %vm1107_vm5, %v1290_v40  ;;  %v1039_v52 = vmax.f32 %v1025_v41, 0.0  ;;  %v1005_v18 = vadd.f32 %v958_v37, %v828_v44 }
 0x124   : > { %v786_v19 = vpop.f32.mrf.mxu0  ;;  %v542_v48 = vadd.f32 %v1798_v43, %v1796_v42 }
 0x125   : > { %v963_v53 = vpop.f32.mrf.mxu1  ;;  %v1291_v56 = vpack.c.bf16 %v1039_v52, %v1039_v52  ;;  %v1026_v57 = vadd.f32 %v1819_v3, %v1005_v18  ;;  %v829_v60 = vadd.f32 %v786_v19, %v523_v49 }
 0x126   : > { %v1437_v61 = vpop.f32.mrf.mxu0 }
 0x127   : > { %v1473_v62 = vpop.f32.mrf.mxu1  ;;  %1110 = vst.msk [vmem:[%s1828_s30 + $0x8] sm:$0xf] %vm1107_vm5, %v1291_v56  ;;  %v1040_v0 = vmax.f32 %v1026_v57, 0.0  ;;  %v1006_v22 = vadd.f32 %v963_v53, %v829_v60  ;;  %v547_v60 = vadd.f32 %v1802_v47, %v1800_v46 }
 0x128   : > { %v789_v23 = vpop.f32.mrf.mxu0 }
 0x129   : > { %v966_v2 = vpop.f32.mrf.mxu1  ;;  %v1292_v4 = vpack.c.bf16 %v1040_v0, %v1040_v0  ;;  %v1027_v5 = vadd.f32 %v1819_v3, %v1006_v22  ;;  %v830_v6 = vadd.f32 %v789_v23, %v526_v63 }
 0x12a   : > { %v1438_v9 = vpop.f32.mrf.mxu0 }
 0x12b   : > { %v1474_v10 = vpop.f32.mrf.mxu1  ;;  %1111 = vst.msk [vmem:[%s1828_s30 + $0xc] sm:$0xf] %vm1107_vm5, %v1292_v4  ;;  %v1041_v14 = vmax.f32 %v1027_v5, 0.0  ;;  %v1007_v26 = vadd.f32 %v966_v2, %v830_v6  ;;  %v550_v4 = vadd.f32 %v1806_v51, %v1804_v50 }
 0x12c   : > { %v794_v27 = vpop.f32.mrf.mxu0 }
 0x12d   : > { %v971_v16 = vpop.f32.mrf.mxu1  ;;  %v1293_v17 = vpack.c.bf16 %v1041_v14, %v1041_v14  ;;  %v1028_v7 = vadd.f32 %v1819_v3, %v1007_v26  ;;  %v831_v8 = vadd.f32 %v794_v27, %v531_v13  ;;  %v555_v27 = vadd.f32 %v1810_v55, %v1808_v54 }
 0x12e   : > { %v1441_v20 = vpop.f32.mrf.mxu0 }
 0x12f   : > { %v1477_v21 = vpop.f32.mrf.mxu1  ;;  %1112 = vst.msk [vmem:[%s1828_s30 + $0x10] sm:$0xf] %vm1107_vm5, %v1293_v17  ;;  %v1042_v12 = vmax.f32 %v1028_v7, 0.0  ;;  %v1008_v30 = vadd.f32 %v971_v16, %v831_v8 }
 0x130   : > { %v797_v31 = vpop.f32.mrf.mxu0 }
 0x131   : > { %v974_v24 = vpop.f32.mrf.mxu1  ;;  %v1294_v25 = vpack.c.bf16 %v1042_v12, %v1042_v12  ;;  %v1029_v28 = vadd.f32 %v1819_v3, %v1008_v30  ;;  %v832_v29 = vadd.f32 %v797_v31, %v534_v11  ;;  %v558_v12 = vadd.f32 %v1814_v59, %v1812_v58 }
 0x132   : > { %v1442_v32 = vpop.f32.mrf.mxu0 }
 0x133   : > { %v1478_v15 = vpop.f32.mrf.mxu1  ;;  %1113 = vst.msk [vmem:[%s1828_s30 + $0x14] sm:$0xf] %vm1107_vm5, %v1294_v25  ;;  %v1043_v33 = vmax.f32 %v1029_v28, 0.0  ;;  %v1009_v34 = vadd.f32 %v974_v24, %v832_v29 }
 0x134   : > { %v802_v35 = vpop.f32.mrf.mxu0 }
 0x135   : > { %v979_v36 = vpop.f32.mrf.mxu1  ;;  %v1295_v37 = vpack.c.bf16 %v1043_v33, %v1043_v33  ;;  %v1030_v40 = vadd.f32 %v1819_v3, %v1009_v34  ;;  %v833_v41 = vadd.f32 %v802_v35, %v539_v1 }
 0x136   : > { %v1445_v44 = vpop.f32.mrf.mxu0 }
 0x137   : > { %v1481_v45 = vpop.f32.mrf.mxu1  ;;  %1114 = vst.msk [vmem:[%s1828_s30 + $0x18] sm:$0xf] %vm1107_vm5, %v1295_v37  ;;  %v1044_v49 = vmax.f32 %v1030_v40, 0.0  ;;  %v1010_v38 = vadd.f32 %v979_v36, %v833_v41 }
 0x138   : > { %v805_v39 = vpop.f32.mrf.mxu0 }
 0x139   : > { %v982_v52 = vpop.f32.mrf.mxu1  ;;  %v1296_v18 = vpack.c.bf16 %v1044_v49, %v1044_v49  ;;  %v1031_v19 = vadd.f32 %v1819_v3, %v1010_v38  ;;  %v834_v53 = vadd.f32 %v805_v39, %v542_v48 }
 0x13a   : > { %v1446_v56 = vpop.f32.mrf.mxu0 }
 0x13b   : > { %v1482_v57 = vpop.f32.mrf.mxu1  ;;  %1115 = vst.msk [vmem:[%s1828_s30 + $0x1c] sm:$0xf] %vm1107_vm5, %v1296_v18  ;;  %v1045_v61 = vmax.f32 %v1031_v19, 0.0  ;;  %v1011_v42 = vadd.f32 %v982_v52, %v834_v53 }
 0x13c   : > { %v810_v43 = vpop.f32.mrf.mxu0 }
 0x13d   : > { %v987_v62 = vpop.f32.mrf.mxu1  ;;  %v1297_v63 = vpack.c.bf16 %v1045_v61, %v1045_v61  ;;  %v1032_v0 = vadd.f32 %v1819_v3, %v1011_v42  ;;  %v835_v22 = vadd.f32 %v810_v43, %v547_v60 }
 0x13e   : > { %v1449_v23 = vpop.f32.mrf.mxu0 }
 0x13f   : > { %v1485_v2 = vpop.f32.mrf.mxu1  ;;  %1116 = vst.msk [vmem:[%s1828_s30 + $0x20] sm:$0xf] %vm1107_vm5, %v1297_v63  ;;  %v1046_v5 = vmax.f32 %v1032_v0, 0.0  ;;  %v1012_v46 = vadd.f32 %v987_v62, %v835_v22 }
 0x140   : > { %v813_v47 = vpop.f32.mrf.mxu0 }
 0x141   : > { %v990_v6 = vpop.f32.mrf.mxu1  ;;  %v1298_v9 = vpack.c.bf16 %v1046_v5, %v1046_v5  ;;  %v1033_v10 = vadd.f32 %v1819_v3, %v1012_v46  ;;  %v836_v13 = vadd.f32 %v813_v47, %v550_v4 }
 0x142   : > { %v1450_v14 = vpop.f32.mrf.mxu0 }
 0x143   : > { %v1486_v26 = vpop.f32.mrf.mxu1  ;;  %1117 = vst.msk [vmem:[%s1828_s30 + $0x24] sm:$0xf] %vm1107_vm5, %v1298_v9  ;;  %v1047_v16 = vmax.f32 %v1033_v10, 0.0  ;;  %v1013_v50 = vadd.f32 %v990_v6, %v836_v13 }
 0x144   : > { %v818_v51 = vpop.f32.mrf.mxu0 }
 0x145   : > { %v995_v17 = vpop.f32.mrf.mxu1  ;;  %v1299_v7 = vpack.c.bf16 %v1047_v16, %v1047_v16  ;;  %v1034_v8 = vadd.f32 %v1819_v3, %v1013_v50  ;;  %v837_v20 = vadd.f32 %v818_v51, %v555_v27 }
 0x146   : > { %v1453_v21 = vpop.f32.mrf.mxu0 }
 0x147   : > { %v1489_v11 = vpop.f32.mrf.mxu1  ;;  %1118 = vst.msk [vmem:[%s1828_s30 + $0x28] sm:$0xf] %vm1107_vm5, %v1299_v7  ;;  %v1048_v54 = vmax.f32 %v1034_v8, 0.0  ;;  %v1014_v55 = vadd.f32 %v995_v17, %v837_v20 }
 0x148   : > { %v821_v30 = vpop.f32.mrf.mxu0 }
 0x149   : > { %v998_v31 = vpop.f32.mrf.mxu1  ;;  %v1300_v24 = vpack.c.bf16 %v1048_v54, %v1048_v54  ;;  %v1035_v25 = vadd.f32 %v1819_v3, %v1014_v55  ;;  %v838_v28 = vadd.f32 %v821_v30, %v558_v12 }
 0x14a   : > { %v1454_v29 = vpop.f32.mrf.mxu0 }
 0x14b   : > { %v1490_v32 = vpop.f32.mrf.mxu1  ;;  %1119 = vst.msk [vmem:[%s1828_s30 + $0x2c] sm:$0xf] %vm1107_vm5, %v1300_v24  ;;  %v1049_v15 = vmax.f32 %v1035_v25, 0.0  ;;  %v1015_v1 = vadd.f32 %v998_v31, %v838_v28 }
 0x14d   : > { %v1301_v33 = vpack.c.bf16 %v1049_v15, %v1049_v15  ;;  %v1036_v58 = vadd.f32 %v1819_v3, %v1015_v1 }
 0x14f   : > { %1120 = vst.msk [vmem:[%s1828_s30 + $0x30] sm:$0xf] %vm1107_vm5, %v1301_v33  ;;  %v1050_v59 = vmax.f32 %v1036_v58, 0.0 }
 0x151   : > { %v1302_v34 = vpack.c.bf16 %v1050_v59, %v1050_v59 }
 0x153   : > { %1122 = vst.msk [vmem:[%s1828_s30 + $0x34] sm:$0x7] %vm1121_vm6, %v1302_v34 }
 0x154 PF: > { %s13_s12 = sadd.s32 1, %s1541_s12  }
 0x155   : > { %p10_p4 = scmp.ge.s32.totalorder %s13_s12, 4  }
 0x157   :  { %12 = sbr.rel (!%p10_p4) target bundleno = 1 (0x1), region = 65 }

// kernel: conv_dqn_forward.5
= control target key start
LH: loop header
LB: loop body
LE: loop exit
PB: predicated region body
PF: predicated region fallthrough
CT: control target
= control target key end

     0   :  { %s1093_s12 = smov 0   ;;  %s1223_s0 = inlined_call_operand.vmem [shape: bf16[2,26,128], index: 0, kind: input, shape index: {}]   ;;  %s1224_s1 = inlined_call_operand.vmem [shape: bf16[4,128,64], index: 1, kind: input, shape index: {}]   ;;  %s1225_s2 = inlined_call_operand.vmem [shape: f32[1,64], index: 2, kind: input, shape index: {}]   ;;  %s1226_s3 = inlined_call_operand.vmem [shape: bf16[2,20,64], index: 3, kind: output, shape index: {}]  }
   0x1 LB: > { %s794_s13 = sadd.s32 4294967295, %s1071_s12   ;;  %p798_p0 = scmp.ge.s32.totalorder %s1071_s12, 1  ;;  %s1071_s12 = sphi %s1093_s12, %s13_s12  }
   0x2   : > { %p137_p1 = scmp.lt.s32.totalorder %s1071_s12, 3 }
   0x4   : > { %p138_p2 = pnand %p798_p0, %p137_p1 }
   0x5   : > { %p161_p3 = scmp.lt.s32.totalorder (!%p138_p2), %s794_s13, 1 }
   0x6   : > { %141 = sbr.rel (%p138_p2) target bundleno = 286 (0x11e), region = 32 }
   0xb   : > { %v1027_v0 = vld [vmem:[%s1224_s1 + $0x78] sm:$0xff]   ;;  %v1029_v2 = vld [vmem:[%s1224_s1 + $0x70] sm:$0xff]   ;;  %v1031_v4 = vld [vmem:[%s1224_s1 + $0x68] sm:$0xff]   ;;  %s1228_s13 = smov (!%p161_p3, %s794_s13), 1  ;;  %vm217_vm0 = vsmask.f32 7424 }
   0xc   : > { %v1028_v1 = vld [vmem:[%s1224_s1 + $0x38] sm:$0xff]   ;;  %938 = vmatprep.subr.bf16.mxu0 %v1027_v0  ;;  %v1030_v3 = vld [vmem:[%s1224_s1 + $0x30] sm:$0xff]   ;;  %v1032_v5 = vld [vmem:[%s1224_s1 + $0x28] sm:$0xff]   ;;  %s894_s30 = sshll.u32 %s1228_s13, 4  ;;  %vm603_vm1 = vcmask 1044480   ;;  %s1018_s7 = smul.u32 12, %s1228_s13 }
   0xd   : > { %958 = vmatprep.subr.bf16.mxu1 %v1028_v1  ;;  %939 = vmatpush3.bf16.msra.mxu0 %v1027_v0  ;;  %v1033_v6 = vld [vmem:[%s1224_s1 + $0x60] sm:$0xff]   ;;  %v1035_v8 = vld [vmem:[%s1224_s1 + $0x58] sm:$0xff]   ;;  %s1137_s10 = scalar_lea.vmem %s1223_s0, %s894_s30  ;;  %v1037_v10 = vld [vmem:[%s1224_s1 + $0x50] sm:$0xff]   ;;  %vm463_vm2 = vsmask.f32 5376  ;;  %vm737_vm3 = vcmask 517120  }
   0xe   : > { %959 = vmatpush3.bf16.msra.mxu1 %v1028_v1  ;;  %940 = vmatprep.subr.bf16.mxu0 %v1029_v2  ;;  %v1034_v7 = vld [vmem:[%s1224_s1 + $0x20] sm:$0xff]   ;;  %v1036_v9 = vld [vmem:[%s1224_s1 + $0x18] sm:$0xff]   ;;  %v1038_v11 = vld [vmem:[%s1224_s1 + $0x10] sm:$0xff]   ;;  %s170_s11 = scalar_lea.vmem %s1226_s3, %s1018_s7  ;;  %vm734_vm4 = vcmask 519168  }
   0xf   : > { %960 = vmatprep.subr.bf16.mxu1 %v1030_v3  ;;  %v1043_v12 = vld [vmem:[%s1137_s10] sm:$0xff]   ;;  %v1044_v13 = vld [vmem:[%s1137_s10 + $0x8] ss:$0 sps:$4 sm:$0x77]   ;;  %v1046_v26 = vld [vmem:[%s1224_s1 + $0xb8] sm:$0xff]  }
  0x10   : > { %v1039_v14 = vld [vmem:[%s1224_s1 + $0x48] sm:$0xff]   ;;  %v219_v16 = vshrl.u32 %v1043_v12, 16  ;;  %v221_v17 = vshll.u32 %v1043_v12, 16  ;;  %v226_v18 = vshll.u32 %v1044_v13, 16  ;;  %974 = vmatprep.mubr.bf16.mxu1 %v1043_v12  ;;  %v1041_v22 = vld [vmem:[%s1224_s1 + $0x40] sm:$0xff]   ;;  %v230_v25 = vshrl.u32 %v1044_v13, 16 }
  0x11   : > { %941 = vmatpush3.bf16.msra.mxu0 %v1029_v2  ;;  %v1040_v15 = vld [vmem:[%s1224_s1 + $0x8] sm:$0xff]   ;;  %v1042_v23 = vld [vmem:[%s1224_s1] sm:$0xff]   ;;  %v1047_v28 = vld [vmem:[%s1224_s1 + $0xf8] sm:$0xff]  }
  0x12   : > { %961 = vmatpush3.bf16.msra.mxu1 %v1030_v3  ;;  %942 = vmatprep.subr.bf16.mxu0 %v1031_v4  ;;  %v223_v19 = vrot.slane %v221_v17, 1  ;;  %v228_v20 = vrot.slane %v226_v18, 1  ;;  %v1045_v27 = vld [vmem:[%s1137_s10 + $0x8] ss:$0 sps:$4 sm:$0x33]   ;;  %v1048_v30 = vld [vmem:[%s1224_s1 + $0xb0] sm:$0xff]  }
  0x13   : > { %962 = vmatprep.subr.bf16.mxu1 %v1032_v5  ;;  %v1049_v31 = vld [vmem:[%s1224_s1 + $0xf0] sm:$0xff]   ;;  %v1050_v32 = vld [vmem:[%s1224_s1 + $0xa8] sm:$0xff]   ;;  %v432_v33 = vld [vmem:[%s1137_s10] sm:$0xc] }
  0x14   : > { %v224_v21 = vor.u32 %v223_v19, %v219_v16  ;;  %v232_v29 = vor.u32 %v230_v25, %v228_v20  ;;  %v433_v34 = vld [vmem:[%s1137_s10 + $0x4] sm:$0xf]  ;;  %v1063_v36 = vld [vmem:[%s1137_s10 + $0x8] sm:$0x1f]   ;;  %v582_v38 = vld [vmem:[%s1137_s10] sm:$0x8] }
  0x15   : > { %943 = vmatpush3.bf16.msra.mxu0 %v1031_v4  ;;  %v853_v35 = vcombine.low %v432_v33, %v433_v34  ;;  %v1051_v37 = vld [vmem:[%s1224_s1 + $0xe8] sm:$0xff]   ;;  %v473_v41 = vshrl.u32 %v1063_v36, 16  ;;  %v476_v42 = vshll.u32 %v1063_v36, 16  ;;  %v879_v43 = vcombine.low %v582_v38, %v433_v34  ;;  %v1052_v45 = vld [vmem:[%s1224_s1 + $0xa0] sm:$0xff]   ;;  %v1054_v55 = vld [vmem:[%s1224_s1 + $0x98] sm:$0xff]  }
  0x16   : > { %963 = vmatpush3.bf16.msra.mxu1 %v1032_v5  ;;  %944 = vmatprep.subr.bf16.mxu0 %v1033_v6  ;;  %v229_v24 = vsel %vm217_vm0, %v224_v21, %v228_v20  ;;  %v605_v44 = vrot.slane %v1063_v36, 3  ;;  %v1053_v50 = vld [vmem:[%s1224_s1 + $0xe0] sm:$0xff]   ;;  %v1055_v57 = vld [vmem:[%s1224_s1 + $0xd8] sm:$0xff]   ;;  %v1056_v58 = vld [vmem:[%s1224_s1 + $0x90] sm:$0xff]  }
  0x17   : > { %964 = vmatprep.subr.bf16.mxu1 %v1034_v7  ;;  %954 = vmatprep.mubr.bf16.mxu0 %v229_v24  ;;  %v465_v39 = vshrl.u32 %v853_v35, 16  ;;  %v468_v40 = vshll.u32 %v853_v35, 16  ;;  %v475_v48 = vrot.slane %v473_v41, 2  ;;  %v478_v49 = vrot.slane %v476_v42, 3  ;;  %v1057_v59 = vld [vmem:[%s1224_s1 + $0xd0] sm:$0xff]   ;;  %v1058_v60 = vld [vmem:[%s1224_s1 + $0x88] sm:$0xff]  }
  0x18   : > { %v604_v51 = vrot.slane %v879_v43, 3  ;;  %v1059_v61 = vld [vmem:[%s1224_s1 + $0xc8] sm:$0xff]   ;;  %v1060_v62 = vld [vmem:[%s1224_s1 + $0x80] sm:$0xff]  }
  0x19   : > { %945 = vmatpush3.bf16.msra.mxu0 %v1033_v6  ;;  %v467_v46 = vrot.slane %v465_v39, 2  ;;  %v470_v47 = vrot.slane %v468_v40, 3  ;;  %v479_v53 = vor.u32 %v478_v49, %v475_v48  ;;  %v1061_v63 = vld [vmem:[%s1224_s1 + $0xc0] sm:$0xff]  }
  0x1a   : > { %965 = vmatpush3.bf16.msra.mxu1 %v1034_v7  ;;  %946 = vmatprep.subr.bf16.mxu0 %v1035_v8  ;;  %v606_v54 = vsel %vm603_vm1, %v604_v51, %v605_v44  ;;  %v888_v13 = vld [vmem:[%s1225_s2] ss:$0 sm:$0xff] }
  0x1b   : > { %966 = vmatprep.subr.bf16.mxu1 %v1036_v9  ;;  %v471_v52 = vor.u32 %v470_v47, %v467_v46 }
  0x1d   : > { %947 = vmatpush3.bf16.msra.mxu0 %v1035_v8  ;;  %v480_v56 = vsel %vm463_vm2, %v471_v52, %v479_v53 }
  0x1e   : > { %967 = vmatpush3.bf16.msra.mxu1 %v1036_v9  ;;  %948 = vmatprep.subr.bf16.mxu0 %v1037_v10 }
  0x1f   : > { %968 = vmatprep.subr.bf16.mxu1 %v1038_v11 }
  0x21   : > { %949 = vmatpush3.bf16.msra.mxu0 %v1037_v10 }
  0x22   : > { %969 = vmatpush3.bf16.msra.mxu1 %v1038_v11  ;;  %950 = vmatprep.subr.bf16.mxu0 %v1039_v14 }
  0x23   : > { %970 = vmatprep.subr.bf16.mxu1 %v1040_v15 }
  0x25   : > { %951 = vmatpush3.bf16.msra.mxu0 %v1039_v14 }
  0x26   : > { %971 = vmatpush3.bf16.msra.mxu1 %v1040_v15  ;;  %952 = vmatprep.subr.bf16.mxu0 %v1041_v22 }
  0x27   : > { %972 = vmatprep.subr.bf16.mxu1 %v1042_v23 }
  0x29   : > { %953 = vmatpush3.bf16.msra.mxu0 %v1041_v22 }
  0x2a   : > { %973 = vmatpush3.bf16.msra.mxu1 %v1042_v23  ;;  %978 = vmatprep.subr.bf16.mxu0 %v1046_v26 }
  0x2b   : > { %998 = vmatprep.subr.bf16.mxu1 %v1047_v28 }
  0x2c   : > { %955 = vmatmul.mubr.bf16.vlgmr.msra.gmra.mxu0 %v232_v29 }
  0x2d   : > { %975 = vmatmul.mubr.bf16.vlgmr.msra.gmra.mxu1 %v1045_v27  ;;  %979 = vmatpush3.bf16.msra.mxu0 %v1046_v26 }
  0x2e   : > { %999 = vmatpush3.bf16.msra.mxu1 %v1047_v28  ;;  %980 = vmatprep.subr.bf16.mxu0 %v1048_v30 }
  0x2f   : > { %1000 = vmatprep.subr.bf16.mxu1 %v1049_v31  ;;  %994 = vmatprep.mubr.bf16.mxu0 %v480_v56 }
  0x30   : > { %1014 = vmatprep.mubr.bf16.mxu1 %v606_v54 }
  0x31   : > { %981 = vmatpush3.bf16.msra.mxu0 %v1048_v30 }
  0x32   : > { %1001 = vmatpush3.bf16.msra.mxu1 %v1049_v31  ;;  %982 = vmatprep.subr.bf16.mxu0 %v1050_v32 }
  0x33   : > { %1002 = vmatprep.subr.bf16.mxu1 %v1051_v37 }
  0x35   : > { %983 = vmatpush3.bf16.msra.mxu0 %v1050_v32 }
  0x36   : > { %1003 = vmatpush3.bf16.msra.mxu1 %v1051_v37  ;;  %984 = vmatprep.subr.bf16.mxu0 %v1052_v45 }
  0x37   : > { %1004 = vmatprep.subr.bf16.mxu1 %v1053_v50 }
  0x39   : > { %985 = vmatpush3.bf16.msra.mxu0 %v1052_v45 }
  0x3a   : > { %1005 = vmatpush3.bf16.msra.mxu1 %v1053_v50  ;;  %986 = vmatprep.subr.bf16.mxu0 %v1054_v55 }
  0x3b   : > { %1006 = vmatprep.subr.bf16.mxu1 %v1055_v57 }
  0x3d   : > { %987 = vmatpush3.bf16.msra.mxu0 %v1054_v55 }
  0x3e   : > { %1007 = vmatpush3.bf16.msra.mxu1 %v1055_v57  ;;  %988 = vmatprep.subr.bf16.mxu0 %v1056_v58 }
  0x3f   : > { %1008 = vmatprep.subr.bf16.mxu1 %v1057_v59 }
  0x41   : > { %989 = vmatpush3.bf16.msra.mxu0 %v1056_v58 }
  0x42   : > { %1009 = vmatpush3.bf16.msra.mxu1 %v1057_v59  ;;  %990 = vmatprep.subr.bf16.mxu0 %v1058_v60 }
  0x43   : > { %1010 = vmatprep.subr.bf16.mxu1 %v1059_v61 }
  0x45   : > { %991 = vmatpush3.bf16.msra.mxu0 %v1058_v60 }
  0x46   : > { %1011 = vmatpush3.bf16.msra.mxu1 %v1059_v61  ;;  %992 = vmatprep.subr.bf16.mxu0 %v1060_v62 }
  0x47   : > { %1012 = vmatprep.subr.bf16.mxu1 %v1061_v63 }
  0x49   : > { %993 = vmatpush3.bf16.msra.mxu0 %v1060_v62 }
  0x4a   : > { %1013 = vmatpush3.bf16.msra.mxu1 %v1061_v63 }
  0x4c   : > { %995 = vmatmul.mubr.bf16.vlgmr.msra.gmra.mxu0 %v479_v53 }
  0x4d   : > { %1015 = vmatmul.mubr.bf16.vlgmr.msra.gmra.mxu1 %v605_v44 }
  0xec   : > { %v956_v0 = vpop.f32.mrf.mxu0 }
  0xed   : > { %v976_v1 = vpop.f32.mrf.mxu1 }
  0xee   : > { %v317_v2 = vpop.f32.mrf.mxu0  ;;  %v427_v7 = vadd.f32 %v976_v1, %v956_v0 }
  0xef   : > { %v418_v3 = vpop.f32.mrf.mxu1 }
  0xf0   : > { %v957_v4 = vpop.f32.mrf.mxu0  ;;  %v419_v10 = vadd.f32 %v418_v3, %v317_v2 }
  0xf1   : > { %v977_v5 = vpop.f32.mrf.mxu1 }
  0xf2   : > { %v320_v6 = vpop.f32.mrf.mxu0 }
  0xf3   : > { %v421_v8 = vpop.f32.mrf.mxu1 }
  0xf4   : > { %v422_v19 = vadd.f32 %v421_v8, %v320_v6 }
 0x10c   : > { %v996_v9 = vpop.f32.mrf.mxu0 }
 0x10d   : > { %v581_v11 = vadd.f32 %v996_v9, %v427_v7  ;;  %v1016_v12 = vpop.f32.mrf.mxu1 }
 0x10e   : > { %v565_v14 = vpop.f32.mrf.mxu0 }
 0x10f   : > { %v707_v15 = vadd.f32 %v1016_v12, %v581_v11  ;;  %v579_v16 = vadd.f32 %v565_v14, %v419_v10  ;;  %v691_v17 = vpop.f32.mrf.mxu1 }
 0x110   : > { %v997_v18 = vpop.f32.mrf.mxu0 }
 0x111   : > { %v717_v20 = vadd.f32 %v888_v13, %v707_v15  ;;  %v705_v21 = vadd.f32 %v691_v17, %v579_v16  ;;  %v1017_v22 = vpop.f32.mrf.mxu1 }
 0x112   : > { %v568_v23 = vpop.f32.mrf.mxu0 }
 0x113   : > { %v720_v24 = vmax.f32 %v717_v20, 0.0  ;;  %v715_v25 = vadd.f32 %v888_v13, %v705_v21  ;;  %v580_v26 = vadd.f32 %v568_v23, %v422_v19  ;;  %v694_v27 = vpop.f32.mrf.mxu1 }
 0x115   : > { %v897_v28 = vpack.c.bf16 %v720_v24, %v720_v24  ;;  %v718_v29 = vmax.f32 %v715_v25, 0.0  ;;  %v706_v30 = vadd.f32 %v694_v27, %v580_v26 }
 0x117   : > { %738 = vst.msk [vmem:[%s170_s11 + $0x8] sm:$0x3] %vm737_vm3, %v897_v28  ;;  %v895_v31 = vpack.c.bf16 %v718_v29, %v718_v29  ;;  %v716_v32 = vadd.f32 %v888_v13, %v706_v30 }
 0x119   : > { %735 = vst.msk [vmem:[%s170_s11] sm:$0xf] %vm734_vm4, %v895_v31  ;;  %v719_v33 = vmax.f32 %v716_v32, 0.0 }
 0x11b   : > { %v896_v34 = vpack.c.bf16 %v719_v33, %v719_v33 }
 0x11d   : > { %736 = vst.msk [vmem:[%s170_s11 + $0x4] sm:$0xf] %vm734_vm4, %v896_v34 }
 0x11e PF: > { %s13_s12 = sadd.s32 1, %s1071_s12  }
 0x11f   : > { %p10_p4 = scmp.ge.s32.totalorder %s13_s12, 4  }
 0x121   :  { %12 = sbr.rel (!%p10_p4) target bundleno = 1 (0x1), region = 65 }

// kernel: conv_dqn_forward.6
= control target key start
LH: loop header
LB: loop body
LE: loop exit
PB: predicated region body
PF: predicated region fallthrough
CT: control target
= control target key end

     0   :  { %s1353_s12 = smov 0   ;;  %s1561_s0 = inlined_call_operand.vmem [shape: bf16[2,18,64], index: 0, kind: input, shape index: {}]   ;;  %s1562_s1 = inlined_call_operand.vmem [shape: bf16[9,64,64], index: 1, kind: input, shape index: {}]   ;;  %s1563_s2 = inlined_call_operand.vmem [shape: f32[1,64], index: 2, kind: input, shape index: {}]   ;;  %s1564_s3 = inlined_call_operand.vmem [shape: bf16[2,8,64], index: 3, kind: output, shape index: {}]  }
   0x1 LB: > { %s990_s13 = sadd.s32 4294967295, %s1329_s12   ;;  %p994_p0 = scmp.ge.s32.totalorder %s1329_s12, 1  ;;  %s1329_s12 = sphi %s1353_s12, %s13_s12  }
   0x2   : > { %p137_p1 = scmp.lt.s32.totalorder %s1329_s12, 3 }
   0x4   : > { %p138_p2 = pnand %p994_p0, %p137_p1 }
   0x5   : > { %p160_p3 = scmp.lt.s32.totalorder (!%p138_p2), %s990_s13, 1 }
   0x6   : > { %141 = sbr.rel (%p138_p2) target bundleno = 294 (0x126), region = 32 }
   0xb   : > { %v1280_v0 = vld [vmem:[%s1562_s1 + $0x38] sm:$0xff]   ;;  %v1331_v1 = vmov 0.0   ;;  %v1282_v3 = vld [vmem:[%s1562_s1 + $0x30] sm:$0xff]   ;;  %vm1332_vm0 = vmmov 0   ;;  %s1566_s13 = smov (!%p160_p3, %s990_s13), 1  ;;  %v1284_v5 = vld [vmem:[%s1562_s1 + $0x28] sm:$0xff]  }
   0xc   : > { %1161 = vmatprep.subr.bf16.mxu0 %v1331_v1  ;;  %1173 = vmatprep.subr.bf16.mxu1 %v1331_v1  ;;  %v1281_v2 = vld [vmem:[%s1562_s1 + $0x18] sm:$0xff]   ;;  %v1283_v4 = vld [vmem:[%s1562_s1 + $0x10] sm:$0xff]   ;;  %s1269_s24 = smul.u32 12, %s1566_s13  ;;  %v1285_v6 = vld [vmem:[%s1562_s1 + $0x8] sm:$0xff]   ;;  %vm225_vm1 = vcmask 523264   ;;  %s996_s18 = sshll.u32 %s1566_s13, 2 }
   0xd   : > { %1162 = vmatpush3.bf16.msra.mxu0 %v1280_v0  ;;  %1169 = vmatprep.mubr.msk.bf16.mxu0 %vm1332_vm0, %v1331_v1  ;;  %v1286_v9 = vld [vmem:[%s1562_s1 + $0x20] sm:$0xff]   ;;  %v1289_v15 = vld [vmem:[%s1562_s1 + $0x58] sm:$0xff]   ;;  %v1291_v18 = vld [vmem:[%s1562_s1 + $0x50] sm:$0xff]   ;;  %s168_s21 = scalar_lea.vmem %s1564_s3, %s996_s18  ;;  %vm935_vm2 = vcmask 519168  }
   0xe   : > { %1174 = vmatpush3.bf16.msra.mxu1 %v1281_v2  ;;  %1163 = vmatprep.subr.bf16.mxu0 %v1331_v1  ;;  %s1395_s29 = scalar_lea.vmem %s1561_s0, %s1269_s24  ;;  %v1287_v11 = vld [vmem:[%s1562_s1] sm:$0xff]   ;;  %v1290_v16 = vld [vmem:[%s1562_s1 + $0x78] sm:$0xff]   ;;  %v1292_v19 = vld [vmem:[%s1562_s1 + $0x70] sm:$0xff]  }
   0xf   : > { %1175 = vmatprep.subr.bf16.mxu1 %v1331_v1  ;;  %1181 = vmatprep.mubr.msk.bf16.mxu1 %vm1332_vm0, %v1331_v1  ;;  %v170_v7 = vld [vmem:[%s1395_s29] sm:$0xf]  ;;  %v179_v8 = vld [vmem:[%s1395_s29 + $0x4] sm:$0x1]  ;;  %v1293_v20 = vld [vmem:[%s1562_s1 + $0x48] sm:$0xff]  }
  0x10   : > { %v1005_v10 = vcombine.low %v170_v7, %v179_v8  ;;  %v1294_v21 = vld [vmem:[%s1562_s1 + $0x68] sm:$0xff]   ;;  %v336_v22 = vld [vmem:[%s1395_s29] sm:$0xe]  ;;  %v419_v24 = vld [vmem:[%s1395_s29 + $0x4] sm:$0x3] }
  0x11   : > { %1164 = vmatpush3.bf16.msra.mxu0 %v1282_v3  ;;  %v418_v23 = vld [vmem:[%s1395_s29] sm:$0xc]  ;;  %v1024_v26 = vcombine.low %v336_v22, %v179_v8  ;;  %v1298_v29 = vld [vmem:[%s1562_s1 + $0x98] sm:$0xff]   ;;  %v503_v30 = vld [vmem:[%s1395_s29 + $0x4] sm:$0x7] }
  0x12   : > { %1176 = vmatpush3.bf16.msra.mxu1 %v1283_v4  ;;  %1165 = vmatprep.subr.bf16.mxu0 %v1331_v1  ;;  %v195_v12 = vshrl.u32 %v1005_v10, 16  ;;  %v197_v13 = vshll.u32 %v1005_v10, 16  ;;  %v1295_v25 = vld [vmem:[%s1562_s1 + $0x40] sm:$0xff]   ;;  %v1038_v27 = vcombine.low %v418_v23, %v419_v24  ;;  %v1301_v33 = vld [vmem:[%s1562_s1 + $0xb8] sm:$0xff]   ;;  %v1052_v34 = vcombine.low %v418_v23, %v503_v30  ;;  %v1302_v35 = vld [vmem:[%s1562_s1 + $0x90] sm:$0xff]  }
  0x13   : > { %1177 = vmatprep.subr.bf16.mxu1 %v1331_v1  ;;  %v1296_v28 = vld [vmem:[%s1562_s1 + $0x60] sm:$0xff]   ;;  %v349_v31 = vrot.slane %v1024_v26, 1  ;;  %v1303_v36 = vld [vmem:[%s1562_s1 + $0xb0] sm:$0xff]   ;;  %v1304_v39 = vld [vmem:[%s1562_s1 + $0x88] sm:$0xff]  }
  0x14   : > { %v199_v14 = vrot.slane %v197_v13, 1  ;;  %v434_v32 = vrot.slane %v1038_v27, 2  ;;  %v517_v37 = vshrl.u32 %v1052_v34, 16  ;;  %v520_v38 = vshll.u32 %v1052_v34, 16  ;;  %v1305_v40 = vld [vmem:[%s1562_s1 + $0xa8] sm:$0xff]   ;;  %v1306_v45 = vld [vmem:[%s1562_s1 + $0x80] sm:$0xff]  }
  0x15   : > { %1166 = vmatpush3.bf16.msra.mxu0 %v1284_v5  ;;  %v592_v41 = vld [vmem:[%s1395_s29] sm:$0x8]  ;;  %v1308_v48 = vld [vmem:[%s1562_s1 + $0xd8] sm:$0xff]   ;;  %v752_v51 = vld [vmem:[%s1395_s29 + $0x4] sm:$0xf] }
  0x16   : > { %1178 = vmatpush3.bf16.msra.mxu1 %v1285_v6  ;;  %1167 = vmatprep.subr.bf16.mxu0 %v1331_v1  ;;  %v200_v17 = vor.u32 %v199_v14, %v195_v12  ;;  %v519_v42 = vrot.slane %v517_v37, 2  ;;  %v522_v43 = vrot.slane %v520_v38, 3  ;;  %v1066_v44 = vcombine.low %v592_v41, %v503_v30  ;;  %v1307_v46 = vld [vmem:[%s1562_s1 + $0xa0] sm:$0xff]   ;;  %v1310_v50 = vld [vmem:[%s1562_s1 + $0xf8] sm:$0xff]   ;;  %v753_v52 = vld [vmem:[%s1395_s29 + $0x8] sm:$0x1] }
  0x17   : > { %1179 = vmatprep.subr.bf16.mxu1 %v1331_v1  ;;  %v1093_v53 = vcombine.low %v752_v51, %v753_v52  ;;  %v1311_v54 = vld [vmem:[%s1562_s1 + $0xd0] sm:$0xff]   ;;  %v1313_v57 = vld [vmem:[%s1562_s1 + $0xc8] sm:$0xff]   ;;  %v1315_v61 = vld [vmem:[%s1562_s1 + $0xc0] sm:$0xff]  }
  0x18   : > { %v523_v47 = vor.u32 %v522_v43, %v519_v42  ;;  %v605_v49 = vrot.slane %v1066_v44, 3  ;;  %v1312_v55 = vld [vmem:[%s1562_s1 + $0xf0] sm:$0xff]   ;;  %v1314_v58 = vld [vmem:[%s1562_s1 + $0xe8] sm:$0xff]   ;;  %v1316_v62 = vld [vmem:[%s1562_s1 + $0xe0] sm:$0xff]  }
  0x19   : > { %1168 = vmatpush3.bf16.msra.mxu0 %v1286_v9  ;;  %v771_v56 = vshll.u32 %v1093_v53, 16  ;;  %v769_v59 = vshrl.u32 %v1093_v53, 16  ;;  %v674_v0 = vld [vmem:[%s1395_s29 + $0x4] sm:$0xf]  ;;  %v1317_v2 = vld [vmem:[%s1562_s1 + $0x118] sm:$0xff]   ;;  %v1319_v3 = vld [vmem:[%s1562_s1 + $0x110] sm:$0xff]  }
  0x1a   : > { %1180 = vmatpush3.bf16.msra.mxu1 %v1287_v11  ;;  %1185 = vmatprep.subr.bf16.mxu0 %v1331_v1  ;;  %v1320_v4 = vld [vmem:[%s1562_s1 + $0x108] sm:$0xff]   ;;  %v843_v5 = vld [vmem:[%s1395_s29 + $0x4] sm:$0xe] }
  0x1b   : > { %1197 = vmatprep.subr.bf16.mxu1 %v1331_v1  ;;  %v773_v60 = vrot.slane %v771_v56, 1  ;;  %v1107_v6 = vcombine.low %v843_v5, %v753_v52 }
  0x1c   : > { %1170 = vmatmul.mubr.msk.bf16.vlgmr.msra.gmra.mxu0 %vm225_vm1, %v200_v17 }
  0x1d   : > { %1182 = vmatmul.mubr.msk.bf16.vlgmr.msra.gmra.mxu1 %vm225_vm1, %v170_v7  ;;  %1186 = vmatpush3.bf16.msra.mxu0 %v1289_v15  ;;  %v774_v63 = vor.u32 %v773_v60, %v769_v59  ;;  %v1321_v7 = vld [vmem:[%s1562_s1 + $0x100] sm:$0xff]   ;;  %v856_v8 = vrot.slane %v1107_v6, 1 }
  0x1e   : > { %1198 = vmatpush3.bf16.msra.mxu1 %v1290_v16  ;;  %1187 = vmatprep.subr.bf16.mxu0 %v1331_v1 }
  0x1f   : > { %1199 = vmatprep.subr.bf16.mxu1 %v1331_v1  ;;  %1193 = vmatprep.mubr.msk.bf16.mxu0 %vm1332_vm0, %v1331_v1 }
  0x20   : > { %1205 = vmatprep.mubr.msk.bf16.mxu1 %vm1332_vm0, %v1331_v1 }
  0x21   : > { %1188 = vmatpush3.bf16.msra.mxu0 %v1291_v18 }
  0x22   : > { %1200 = vmatpush3.bf16.msra.mxu1 %v1292_v19  ;;  %1189 = vmatprep.subr.bf16.mxu0 %v1331_v1 }
  0x23   : > { %1201 = vmatprep.subr.bf16.mxu1 %v1331_v1 }
  0x25   : > { %1190 = vmatpush3.bf16.msra.mxu0 %v1293_v20 }
  0x26   : > { %1202 = vmatpush3.bf16.msra.mxu1 %v1294_v21  ;;  %1191 = vmatprep.subr.bf16.mxu0 %v1331_v1 }
  0x27   : > { %1203 = vmatprep.subr.bf16.mxu1 %v1331_v1 }
  0x29   : > { %1192 = vmatpush3.bf16.msra.mxu0 %v1295_v25 }
  0x2a   : > { %1204 = vmatpush3.bf16.msra.mxu1 %v1296_v28  ;;  %1209 = vmatprep.subr.bf16.mxu0 %v1331_v1 }
  0x2b   : > { %1221 = vmatprep.subr.bf16.mxu1 %v1331_v1 }
  0x2c   : > { %1194 = vmatmul.mubr.msk.bf16.vlgmr.msra.gmra.mxu0 %vm225_vm1, %v349_v31 }
  0x2d   : > { %1206 = vmatmul.mubr.msk.bf16.vlgmr.msra.gmra.mxu1 %vm225_vm1, %v434_v32  ;;  %1210 = vmatpush3.bf16.msra.mxu0 %v1298_v29 }
  0x2e   : > { %1222 = vmatpush3.bf16.msra.mxu1 %v1301_v33  ;;  %1211 = vmatprep.subr.bf16.mxu0 %v1331_v1 }
  0x2f   : > { %1223 = vmatprep.subr.bf16.mxu1 %v1331_v1  ;;  %1217 = vmatprep.mubr.msk.bf16.mxu0 %vm1332_vm0, %v1331_v1 }
  0x30   : > { %1229 = vmatprep.mubr.msk.bf16.mxu1 %vm1332_vm0, %v1331_v1 }
  0x31   : > { %1212 = vmatpush3.bf16.msra.mxu0 %v1302_v35 }
  0x32   : > { %1224 = vmatpush3.bf16.msra.mxu1 %v1303_v36  ;;  %1213 = vmatprep.subr.bf16.mxu0 %v1331_v1 }
  0x33   : > { %1225 = vmatprep.subr.bf16.mxu1 %v1331_v1 }
  0x35   : > { %1214 = vmatpush3.bf16.msra.mxu0 %v1304_v39 }
  0x36   : > { %1226 = vmatpush3.bf16.msra.mxu1 %v1305_v40  ;;  %1215 = vmatprep.subr.bf16.mxu0 %v1331_v1 }
  0x37   : > { %1227 = vmatprep.subr.bf16.mxu1 %v1331_v1 }
  0x39   : > { %1216 = vmatpush3.bf16.msra.mxu0 %v1306_v45 }
  0x3a   : > { %1228 = vmatpush3.bf16.msra.mxu1 %v1307_v46  ;;  %1233 = vmatprep.subr.bf16.mxu0 %v1331_v1 }
  0x3b   : > { %1245 = vmatprep.subr.bf16.mxu1 %v1331_v1 }
  0x3c   : > { %1218 = vmatmul.mubr.msk.bf16.vlgmr.msra.gmra.mxu0 %vm225_vm1, %v523_v47 }
  0x3d   : > { %1230 = vmatmul.mubr.msk.bf16.vlgmr.msra.gmra.mxu1 %vm225_vm1, %v605_v49  ;;  %1234 = vmatpush3.bf16.msra.mxu0 %v1308_v48  ;;  %v1113_v48 = vld [vmem:[%s1563_s2] ss:$0 sm:$0xff] }
  0x3e   : > { %1246 = vmatpush3.bf16.msra.mxu1 %v1310_v50  ;;  %1235 = vmatprep.subr.bf16.mxu0 %v1331_v1 }
  0x3f   : > { %1247 = vmatprep.subr.bf16.mxu1 %v1331_v1  ;;  %1241 = vmatprep.mubr.msk.bf16.mxu0 %vm1332_vm0, %v1331_v1 }
  0x40   : > { %1253 = vmatprep.mubr.msk.bf16.mxu1 %vm1332_vm0, %v1331_v1 }
  0x41   : > { %1236 = vmatpush3.bf16.msra.mxu0 %v1311_v54 }
  0x42   : > { %1248 = vmatpush3.bf16.msra.mxu1 %v1312_v55  ;;  %1237 = vmatprep.subr.bf16.mxu0 %v1331_v1 }
  0x43   : > { %1249 = vmatprep.subr.bf16.mxu1 %v1331_v1 }
  0x45   : > { %1238 = vmatpush3.bf16.msra.mxu0 %v1313_v57 }
  0x46   : > { %1250 = vmatpush3.bf16.msra.mxu1 %v1314_v58  ;;  %1239 = vmatprep.subr.bf16.mxu0 %v1331_v1 }
  0x47   : > { %1251 = vmatprep.subr.bf16.mxu1 %v1331_v1 }
  0x49   : > { %1240 = vmatpush3.bf16.msra.mxu0 %v1315_v61 }
  0x4a   : > { %1252 = vmatpush3.bf16.msra.mxu1 %v1316_v62  ;;  %1257 = vmatprep.subr.bf16.mxu0 %v1331_v1 }
  0x4c   : > { %1242 = vmatmul.mubr.msk.bf16.vlgmr.msra.gmra.mxu0 %vm225_vm1, %v674_v0 }
  0x4d   : > { %1254 = vmatmul.mubr.msk.bf16.vlgmr.msra.gmra.mxu1 %vm225_vm1, %v774_v63  ;;  %1258 = vmatpush3.bf16.msra.mxu0 %v1317_v2 }
  0x4e   : > { %1265 = vmatprep.mubr.msk.bf16.mxu0 %vm1332_vm0, %v1331_v1  ;;  %1259 = vmatprep.subr.bf16.mxu0 %v1331_v1 }
  0x51   : > { %1260 = vmatpush3.bf16.msra.mxu0 %v1319_v3 }
  0x52   : > { %1261 = vmatprep.subr.bf16.mxu0 %v1331_v1 }
  0x55   : > { %1262 = vmatpush3.bf16.msra.mxu0 %v1320_v4 }
  0x56   : > { %1263 = vmatprep.subr.bf16.mxu0 %v1331_v1 }
  0x59   : > { %1264 = vmatpush3.bf16.msra.mxu0 %v1321_v7 }
  0x5c   : > { %1266 = vmatmul.mubr.msk.bf16.vlgmr.msra.gmra.mxu0 %vm225_vm1, %v856_v8 }
  0xdc   : > { %v263_v9 = vpop.f32.mrf.mxu0 }
  0xdd   : > { %v330_v10 = vpop.f32.mrf.mxu1 }
  0xde   : > { %v1171_v11 = vpop.f32.mrf.mxu0  ;;  %v331_v32 = vadd.f32 %v330_v10, %v263_v9 }
  0xdf   : > { %v1183_v12 = vpop.f32.mrf.mxu1 }
  0xe0   : > { %v266_v13 = vpop.f32.mrf.mxu0 }
  0xe1   : > { %v333_v14 = vpop.f32.mrf.mxu1 }
  0xe2   : > { %v1172_v15 = vpop.f32.mrf.mxu0 }
  0xe3   : > { %v1184_v16 = vpop.f32.mrf.mxu1 }
  0xec   : > { %v411_v17 = vpop.f32.mrf.mxu0 }
  0xed   : > { %v496_v18 = vpop.f32.mrf.mxu1  ;;  %v417_v33 = vadd.f32 %v411_v17, %v331_v32 }
  0xee   : > { %v1195_v19 = vpop.f32.mrf.mxu0 }
  0xef   : > { %v1207_v20 = vpop.f32.mrf.mxu1  ;;  %v502_v38 = vadd.f32 %v496_v18, %v417_v33 }
  0xf0   : > { %v414_v21 = vpop.f32.mrf.mxu0 }
  0xf1   : > { %v499_v22 = vpop.f32.mrf.mxu1 }
  0xf2   : > { %v1196_v23 = vpop.f32.mrf.mxu0 }
  0xf3   : > { %v1208_v1 = vpop.f32.mrf.mxu1 }
  0xfc   : > { %v585_v24 = vpop.f32.mrf.mxu0 }
  0xfd   : > { %v667_v25 = vpop.f32.mrf.mxu1  ;;  %v591_v41 = vadd.f32 %v585_v24, %v502_v38 }
  0xfe   : > { %v1219_v26 = vpop.f32.mrf.mxu0 }
  0xff   : > { %v1231_v27 = vpop.f32.mrf.mxu1  ;;  %v673_v44 = vadd.f32 %v667_v25, %v591_v41 }
 0x100   : > { %v588_v28 = vpop.f32.mrf.mxu0 }
 0x101   : > { %v670_v29 = vpop.f32.mrf.mxu1 }
 0x102   : > { %v1220_v30 = vpop.f32.mrf.mxu0 }
 0x103   : > { %v1232_v31 = vpop.f32.mrf.mxu1 }
 0x10c   : > { %v745_v34 = vpop.f32.mrf.mxu0 }
 0x10d   : > { %v836_v35 = vpop.f32.mrf.mxu1  ;;  %v751_v45 = vadd.f32 %v745_v34, %v673_v44 }
 0x10e   : > { %v1243_v36 = vpop.f32.mrf.mxu0 }
 0x10f   : > { %v1255_v37 = vpop.f32.mrf.mxu1  ;;  %v842_v46 = vadd.f32 %v836_v35, %v751_v45 }
 0x110   : > { %v748_v39 = vpop.f32.mrf.mxu0 }
 0x111   : > { %v839_v40 = vpop.f32.mrf.mxu1 }
 0x112   : > { %v1244_v42 = vpop.f32.mrf.mxu0 }
 0x113   : > { %v1256_v43 = vpop.f32.mrf.mxu1 }
 0x11c   : > { %v918_v47 = vpop.f32.mrf.mxu0 }
 0x11d   : > { %v924_v49 = vadd.f32 %v918_v47, %v842_v46 }
 0x11e   : > { %v1267_v50 = vpop.f32.mrf.mxu0 }
 0x11f   : > { %v932_v51 = vadd.f32 %v1113_v48, %v924_v49 }
 0x120   : > { %v921_v52 = vpop.f32.mrf.mxu0 }
 0x121   : > { %v933_v53 = vmax.f32 %v932_v51, 0.0 }
 0x122   : > { %v1268_v54 = vpop.f32.mrf.mxu0 }
 0x123   : > { %v934_v55 = vpack.c.bf16 %v933_v53, %v933_v53 }
 0x125   : > { %936 = vst.msk [vmem:[%s168_s21] sm:$0xf] %vm935_vm2, %v934_v55 }
 0x126 PF: > { %s13_s12 = sadd.s32 1, %s1329_s12  }
 0x127   : > { %p10_p4 = scmp.ge.s32.totalorder %s13_s12, 4  }
 0x129   :  { %12 = sbr.rel (!%p10_p4) target bundleno = 1 (0x1), region = 70 }

// kernel: conv_dqn_forward.7
= control target key start
LH: loop header
LB: loop body
LE: loop exit
PB: predicated region body
PF: predicated region fallthrough
CT: control target
= control target key end

     0   :  { %v80_v9 = vlaneseq  ;;  %v750_v13 = vmov 1966171168   ;;  %s957_s0 = inlined_call_operand.vmem [shape: bf16[2,256], index: 0, kind: input, shape index: {}]   ;;  %s958_s1 = inlined_call_operand.vmem [shape: bf16[256,128], index: 1, kind: input, shape index: {}]   ;;  %s959_s2 = inlined_call_operand.vmem [shape: f32[1,128], index: 2, kind: input, shape index: {}]   ;;  %s960_s3 = inlined_call_operand.vmem [shape: bf16[128,256], index: 3, kind: input, shape index: {}]   ;;  %s961_s4 = inlined_call_operand.vmem [shape: f32[1,256], index: 4, kind: input, shape index: {}]   ;;  %s962_s5 = inlined_call_operand.vmem [shape: bf16[256,128], index: 5, kind: input, shape index: {}]   ;;  %s963_s6 = inlined_call_operand.vmem [shape: f32[1,128], index: 6, kind: input, shape index: {}]   ;;  %s964_s7 = inlined_call_operand.hbm [shape: f32[2,128], index: 7, kind: output, shape index: {}]  }
   0x1   :  { %v672_v0 = vld [vmem:[%s958_s1 + $0x78] sm:$0xff]   ;;  %v674_v2 = vld [vmem:[%s958_s1 + $0x70] sm:$0xff]   ;;  %v676_v4 = vld [vmem:[%s958_s1 + $0x68] sm:$0xff]   ;;  %v78_v14 = vunpack.c.l.s4 %v750_v13 }
   0x2   :  { %v673_v1 = vld [vmem:[%s958_s1 + $0x38] sm:$0xff]   ;;  %625 = vmatprep.subr.bf16.mxu0 %v672_v0  ;;  %v675_v3 = vld [vmem:[%s958_s1 + $0x30] sm:$0xff]   ;;  %v677_v5 = vld [vmem:[%s958_s1 + $0x28] sm:$0xff]   ;;  %v829_v15 = vshrl.u32 %v80_v9, 7 }
   0x3   :  { %626 = vmatpush3.bf16.msra.mxu0 %v673_v1  ;;  %v678_v6 = vld [vmem:[%s958_s1 + $0x60] sm:$0xff]   ;;  %v680_v8 = vld [vmem:[%s958_s1 + $0x58] sm:$0xff]   ;;  %v682_v11 = vld [vmem:[%s958_s1 + $0x50] sm:$0xff]   ;;  %v79_v20 = vunpack.c.0.s8 %v78_v14 }
   0x4   :  { %627 = vmatprep.subr.bf16.mxu0 %v674_v2  ;;  %v679_v7 = vld [vmem:[%s958_s1 + $0x20] sm:$0xff]   ;;  %v681_v10 = vld [vmem:[%s958_s1 + $0x18] sm:$0xff]   ;;  %v683_v18 = vld [vmem:[%s958_s1 + $0x10] sm:$0xff]  }
   0x5   :  { %v575_v12 = vld.sshfl [vmem:[%s957_s0] sm:$0x11 pattern:$0x75316420]  ;;  %v688_v16 = vld [vmem:[%s960_s3 + $0x74] ss:$8 sps:$4 sm:$0xff]   ;;  %v82_v24 = vsub.s32 %v79_v20, %v829_v15 }
   0x6   :  { %v690_v17 = vld [vmem:[%s960_s3 + $0x70] ss:$8 sps:$4 sm:$0xff]   ;;  %v76_v19 = vcombine.high %v575_v12, %v575_v12  ;;  %339 = vmatprep.subr.bf16.mxu1 %v688_v16  ;;  %v691_v21 = vld [vmem:[%s960_s3 + $0x64] ss:$8 sps:$4 sm:$0xff]   ;;  %v693_v23 = vld [vmem:[%s960_s3 + $0x60] ss:$8 sps:$4 sm:$0xff]  }
   0x7   :  { %628 = vmatpush3.bf16.msra.mxu0 %v675_v3  ;;  %v684_v22 = vld [vmem:[%s958_s1 + $0x48] sm:$0xff]   ;;  %340 = vmatpush1.bf16.msra.mxu1 %v690_v17  ;;  %v694_v25 = vld [vmem:[%s960_s3 + $0x54] ss:$8 sps:$4 sm:$0xff]   ;;  %v686_v27 = vld [vmem:[%s958_s1 + $0x40] sm:$0xff]   ;;  %v83_v34 = vrot.slane %v575_v12, %v82_v24 }
   0x8   :  { %629 = vmatprep.subr.bf16.mxu0 %v676_v4  ;;  %341 = vmatprep.subr.bf16.mxu1 %v691_v21  ;;  %v685_v26 = vld [vmem:[%s958_s1 + $0x8] sm:$0xff]   ;;  %v90_v28 = vrot.slane %v76_v19, %v82_v24  ;;  %v696_v29 = vld [vmem:[%s960_s3 + $0x50] ss:$8 sps:$4 sm:$0xff]   ;;  %v687_v31 = vld [vmem:[%s958_s1] sm:$0xff]  }
   0x9   :  { %v697_v30 = vld [vmem:[%s960_s3 + $0x44] ss:$8 sps:$4 sm:$0xff]   ;;  %v699_v32 = vld [vmem:[%s960_s3 + $0x40] ss:$8 sps:$4 sm:$0xff]   ;;  %v700_v33 = vld [vmem:[%s960_s3 + $0x34] ss:$8 sps:$4 sm:$0xff]  }
   0xa   :  { %221 = vmatprep.mubr.bf16.mxu0 %v90_v28  ;;  %v702_v35 = vld [vmem:[%s960_s3 + $0x30] ss:$8 sps:$4 sm:$0xff]   ;;  %v703_v36 = vld [vmem:[%s960_s3 + $0x24] ss:$8 sps:$4 sm:$0xff]  }
   0xb   :  { %630 = vmatpush3.bf16.msra.mxu0 %v677_v5  ;;  %342 = vmatpush1.bf16.msra.mxu1 %v693_v23 }
   0xc   :  { %631 = vmatprep.subr.bf16.mxu0 %v678_v6  ;;  %343 = vmatprep.subr.bf16.mxu1 %v694_v25 }
   0xf   :  { %632 = vmatpush3.bf16.msra.mxu0 %v679_v7  ;;  %344 = vmatpush1.bf16.msra.mxu1 %v696_v29 }
  0x10   :  { %633 = vmatprep.subr.bf16.mxu0 %v680_v8  ;;  %345 = vmatprep.subr.bf16.mxu1 %v697_v30 }
  0x13   :  { %634 = vmatpush3.bf16.msra.mxu0 %v681_v10  ;;  %346 = vmatpush1.bf16.msra.mxu1 %v699_v32 }
  0x14   :  { %635 = vmatprep.subr.bf16.mxu0 %v682_v11  ;;  %347 = vmatprep.subr.bf16.mxu1 %v700_v33 }
  0x17   :  { %636 = vmatpush3.bf16.msra.mxu0 %v683_v18  ;;  %348 = vmatpush1.bf16.msra.mxu1 %v702_v35 }
  0x18   :  { %637 = vmatprep.subr.bf16.mxu0 %v684_v22 }
  0x1b   :  { %638 = vmatpush3.bf16.msra.mxu0 %v685_v26 }
  0x1c   :  { %639 = vmatprep.subr.bf16.mxu0 %v686_v27 }
  0x1f   :  { %640 = vmatpush3.bf16.msra.mxu0 %v687_v31 }
  0x22   :  { %222 = vmatmul.mubr.bf16.vlgmr.msra.gmra.mxu0 %v83_v34 }
  0x23   :  { %12 = vsyncpa [#allocation3], 0  ;;  %349 = vmatprep.subr.bf16.mxu1 %v703_v36  ;;  %v705_v37 = vld [vmem:[%s960_s3 + $0x20] ss:$8 sps:$4 sm:$0xff]   ;;  %v706_v38 = vld [vmem:[%s960_s3 + $0x14] ss:$8 sps:$4 sm:$0xff]  }
  0x24   :  { %350 = vmatpush1.bf16.msra.mxu1 %v705_v37  ;;  %v708_v39 = vld [vmem:[%s960_s3 + $0x10] ss:$8 sps:$4 sm:$0xff]   ;;  %v709_v40 = vld [vmem:[%s960_s3 + $0x4] ss:$8 sps:$4 sm:$0xff]   ;;  %v711_v41 = vld [vmem:[%s960_s3] ss:$8 sps:$4 sm:$0xff]  }
  0x25   :  { %351 = vmatprep.subr.bf16.mxu1 %v706_v38  ;;  %v751_v42 = vmov 0   ;;  %v712_v43 = vld [vmem:[%s962_s5 + $0x78] sm:$0xff]   ;;  %v714_v45 = vld [vmem:[%s962_s5 + $0x70] sm:$0xff]   ;;  %v716_v47 = vld [vmem:[%s962_s5 + $0x68] sm:$0xff]   ;;  %v251_v4 = vsub.s32 0, %v829_v15  ;;  %v255_v6 = vsub.s32 1, %v829_v15 }
  0x26   :  { %371 = vmatprep.mubr.bf16.mxu1 %v751_v42  ;;  %v713_v44 = vld [vmem:[%s962_s5 + $0x38] sm:$0xff]   ;;  %647 = vmatprep.subr.bf16.mxu0 %v712_v43  ;;  %v715_v46 = vld [vmem:[%s962_s5 + $0x30] sm:$0xff]   ;;  %v717_v48 = vld [vmem:[%s962_s5 + $0x28] sm:$0xff]   ;;  %s752_s26 = smov [#allocation2]  }
  0x27   :  { %648 = vmatpush3.bf16.msra.mxu0 %v713_v44  ;;  %v718_v49 = vld [vmem:[%s962_s5 + $0x60] sm:$0xff]   ;;  %v720_v51 = vld [vmem:[%s962_s5 + $0x58] sm:$0xff]   ;;  %v722_v53 = vld [vmem:[%s962_s5 + $0x50] sm:$0xff]   ;;  %s566_s27 = sshll.u32 %s752_s26, 4  ;;  %s567_s27 = int_to_ptr.vmem [resolvable:$true] %s566_s27 }
  0x28   :  { %352 = vmatpush1.bf16.msra.mxu1 %v708_v39  ;;  %649 = vmatprep.subr.bf16.mxu0 %v714_v45  ;;  %v719_v50 = vld [vmem:[%s962_s5 + $0x20] sm:$0xff]   ;;  %v721_v52 = vld [vmem:[%s962_s5 + $0x18] sm:$0xff]   ;;  %v723_v54 = vld [vmem:[%s962_s5 + $0x10] sm:$0xff]   ;;  %s728_s28 = scalar_lea.vmem %s567_s27, 32  ;;  %p733_p1 = scmp.lt.s32.totalorder %s567_s27, %s567_s27 }
  0x29   :  { %353 = vmatprep.subr.bf16.mxu1 %v709_v40  ;;  %v574_v56 = vld [vmem:[%s959_s2] ss:$0 sm:$0xff]  ;;  %v724_v0 = vld [vmem:[%s962_s5 + $0x48] sm:$0xff]   ;;  %p729_p0 = scmp.ne.s32.totalorder %s567_s27, %s728_s28  ;;  %p734_p2 = scmp.lt.s32.totalorder %s728_s28, %s728_s28 }
  0x2a   :  { %v725_v1 = vld [vmem:[%s962_s5 + $0x8] sm:$0xff]   ;;  %v726_v2 = vld [vmem:[%s962_s5 + $0x40] sm:$0xff]  }
  0x2b   :  { %650 = vmatpush3.bf16.msra.mxu0 %v715_v46  ;;  %v727_v3 = vld [vmem:[%s962_s5] sm:$0xff]   ;;  %p735_p3 = por %p734_p2, %p733_p1 }
  0x2c   :  { %354 = vmatpush1.bf16.msra.mxu1 %v711_v41  ;;  %651 = vmatprep.subr.bf16.mxu0 %v716_v47  ;;  %v247_v5 = vld [vmem:[%s961_s4] sm:$0x3] }
  0x2d   :  { %v252_v7 = vrot.slane %v247_v5, %v251_v4  ;;  %v256_v8 = vrot.slane %v247_v5, %v255_v6  ;;  %v608_v15 = vld [vmem:[%s963_s6] ss:$0 sm:$0xff]  ;;  %p736_p4 = pnand %p735_p3, %p729_p0 }
  0x2f   :  { %652 = vmatpush3.bf16.msra.mxu0 %v717_v48 }
  0x30   :  { %653 = vmatprep.subr.bf16.mxu0 %v718_v49 }
  0x33   :  { %654 = vmatpush3.bf16.msra.mxu0 %v719_v50 }
  0x34   :  { %655 = vmatprep.subr.bf16.mxu0 %v720_v51 }
  0x37   :  { %656 = vmatpush3.bf16.msra.mxu0 %v721_v52 }
  0x38   :  { %657 = vmatprep.subr.bf16.mxu0 %v722_v53 }
  0x3b   :  { %658 = vmatpush3.bf16.msra.mxu0 %v723_v54 }
  0x3c   :  { %659 = vmatprep.subr.bf16.mxu0 %v724_v0 }
  0x3f   :  { %660 = vmatpush3.bf16.msra.mxu0 %v725_v1 }
  0x40   :  { %661 = vmatprep.subr.bf16.mxu0 %v726_v2 }
  0x43   :  { %662 = vmatpush3.bf16.msra.mxu0 %v727_v3 }
  0xe2   :  { %v641_v55 = vpop.f32.mrf.mxu0 }
  0xe4   :  { %v642_v57 = vpop.f32.mrf.mxu0 }
  0xe5   :  { %v643_v58 = vadd.f32 %v642_v57, %v641_v55 }
  0xe6   :  { %v644_v59 = vpop.f32.mrf.mxu0 }
  0xe7   :  { %v224_v60 = vadd.f32 %v643_v58, %v574_v56 }
  0xe8   :  { %v645_v61 = vpop.f32.mrf.mxu0 }
  0xe9   :  { %v229_v62 = vmax.f32 %v224_v60, 0.0 }
  0xeb   :  { %v230_v63 = vpack.c.bf16 %v229_v62, %v229_v62 }
  0xed   :  { %372 = vmatmul.mubr.bf16.vlgmr.msra.gmra.mxu1 %v230_v63 }
 0x1ad   :  { %v373_v9 = vpop.f32.mrf.mxu1 }
 0x1ae   :  { %v374_v10 = vadd.f32 %v373_v9, %v252_v7 }
 0x1af   :  { %v375_v11 = vpop.f32.mrf.mxu1 }
 0x1b0   :  { %v376_v12 = vadd.f32 %v375_v11, %v256_v8  ;;  %v380_v13 = vmax.f32 %v374_v10, 0.0 }
 0x1b1   :  { %v377_v14 = vpop.f32.mrf.mxu1 }
 0x1b2   :  { %v381_v16 = vmax.f32 %v376_v12, 0.0  ;;  %v382_v19 = vpack.c.bf16 %v380_v13, %v380_v13 }
 0x1b3   :  { %v378_v17 = vpop.f32.mrf.mxu1 }
 0x1b4   :  { %v383_v18 = vpack.c.bf16 %v381_v16, %v381_v16 }
 0x1b6   :  { %551 = vmatprep.mubr.bf16.mxu0 %v383_v18 }
 0x1b7   :  { %552 = vmatmul.mubr.bf16.vlgmr.msra.gmra.mxu0 %v382_v19 }
 0x277   :  { %v663_v20 = vpop.f32.mrf.mxu0 }
 0x279   :  { %v664_v21 = vpop.f32.mrf.mxu0 }
 0x27a   :  { %v665_v22 = vadd.f32 %v664_v21, %v663_v20 }
 0x27b   :  { %v666_v23 = vpop.f32.mrf.mxu0 }
 0x27c   :  { %v554_v24 = vadd.f32 %v665_v22, %v608_v15 }
 0x27d   :  { %v667_v25 = vpop.f32.mrf.mxu0 }
 0x27e   :  { %559 = vst [vmem:[#allocation2] sm:$0x3] %v554_v24 }
 0x27f   :  { %739 = shalt.err (!%p736_p4)
}
 0x280   :  { %569 = dma.vmem_to_hbm [thread:$0]  %s567_s27, 32, %s964_s7, [#allocation3]  }
 0x281   :  { %748 = dma.done.wait [#allocation3], 32  }
 0x282   :  { %749 = vsyncadd [#allocation3], 4294967264 }
 0x283   :  { %573 = vsyncpa [#allocation3], 1 }

</bundles_post_ra>
